<compile_context>
chip_gen: v6e
topology: v6e:2x2x1
jax: 0.10.0
libtpu: 0.0.40
codegen_flags: <defaults>
</compile_context>

<pallas_src>
import functools

import jax
import jax.numpy as jnp
from jax import lax
from jax.experimental import pallas as pl
from jax.experimental.pallas import tpu as pltpu

EPS = 1e-5  # matches nn.InstanceNorm1d default


# ----------------------------- Pallas kernel ------------------------------- #
def squeezed_tcm_kernel(
    x_ref,        # (d_feat, B_blk*T) f32, batch b occupies columns [b*T, (b+1)*T)
    w_in_ref,     # (cd1, d_feat)      bf16
    w_l_ref,      # (cd1, kd1*cd1)     bf16  (taps flattened along contraction)
    w_r_ref,      # (cd1, kd1*cd1)     bf16
    w_out_ref,    # (d_feat, cd1)      bf16
    p_ref,        # (cd1, 128) f32, cols 0..8 = a_l g_l b_l a_r g_r b_r a_o g_o b_o
    o_ref,        # (d_feat, B_blk*T) f32
    *, cd1, kd1, dilation, pad_left, T, B_blk,
):
    NB = B_blk * T
    x = x_ref[...]                                        # (d_feat, NB) f32
    p = p_ref[...]                                        # (cd1, 128)   f32
    a_l, g_l, b_l = p[:, 0:1], p[:, 1:2], p[:, 2:3]
    a_r, g_r, b_r = p[:, 3:4], p[:, 4:5], p[:, 5:6]
    a_o, g_o, b_o = p[:, 6:7], p[:, 7:8], p[:, 8:9]

    # in_conv: 1x1 conv == channel contraction on the MXU (bf16 in, f32 acc).
    h = jnp.dot(w_in_ref[...], x.astype(jnp.bfloat16),
                preferred_element_type=jnp.float32)       # (cd1, NB)

    def prelu(v, a):
        return jnp.where(v >= 0, v, a * v)

    def inst_norm(v, gamma, beta):
        # Per-(batch, channel) stats: each batch is a lane-aligned T-wide segment.
        parts = []
        for b in range(B_blk):
            seg = v[:, b * T:(b + 1) * T]
            m = jnp.mean(seg, axis=-1, keepdims=True)
            var = jnp.mean((seg - m) ** 2, axis=-1, keepdims=True)
            parts.append((seg - m) * lax.rsqrt(var + EPS))
        vn = parts[0] if B_blk == 1 else jnp.concatenate(parts, axis=-1)
        return vn * gamma + beta

    def lane_roll(v, s):
        # Static rotate-right by s along the lane axis (== jnp.roll(v, s, -1)):
        #   rolled[:, t] = v[:, (t - s) % NB].
        # Implemented as two lane slices + concat; s is a Python int.
        s = s % NB
        if s == 0:
            return v
        return jnp.concatenate([v[:, NB - s:], v[:, :NB - s]], axis=-1)

    # Per-tap column masks (shared by both branches).  Tap k at output time t
    # reads input time t - pad_left + k*dilation; zero when that hits the pad.
    # A lane rotation by (pad_left - k*dilation) plus the mask reproduces the
    # ConstantPad1d + dilated Conv1d exactly (wrapped / cross-batch lanes are
    # precisely the masked ones).
    base = lax.broadcasted_iota(jnp.int32, (cd1, T), 1)
    t_idx = base if B_blk == 1 else jnp.concatenate([base] * B_blk, axis=-1)
    shifts, masks = [], []
    for k in range(kd1):
        lo = pad_left - k * dilation
        shifts.append(lo)
        if lo == 0:
            masks.append(None)                     # identity tap: no roll/mask
        elif lo > 0:
            masks.append(t_idx >= lo)              # left (causal) zero padding
        else:
            masks.append(t_idx < T + lo)           # right zero padding (non-causal)

    def dilated_branch(a, g, b, w_ref):
        y = inst_norm(prelu(h, a), g, b)                              # (cd1, NB) f32
        segs = []
        for k in range(kd1):
            if masks[k] is None:
                segs.append(y)
            else:
                rolled = lane_roll(y, shifts[k])
                segs.append(jnp.where(masks[k], rolled, 0.0))
        stacked = segs[0] if kd1 == 1 else jnp.concatenate(segs, axis=0)
        # All kd1 taps in ONE MXU matmul: (cd1, kd1*cd1) @ (kd1*cd1, NB).
        return jnp.dot(w_ref[...], stacked.astype(jnp.bfloat16),
                       preferred_element_type=jnp.float32)

    left = dilated_branch(a_l, g_l, b_l, w_l_ref)
    right = jax.nn.sigmoid(dilated_branch(a_r, g_r, b_r, w_r_ref))
    gate = left * right

    # out_conv: PReLU -> InstanceNorm -> 1x1 conv (MXU), then residual add.
    y = inst_norm(prelu(gate, a_o), g_o, b_o)
    out = jnp.dot(w_out_ref[...], y.astype(jnp.bfloat16),
                  preferred_element_type=jnp.float32)                # (d_feat, NB)
    o_ref[...] = (out + x).astype(o_ref.dtype)


# ------------------------------- wrapper ------------------------------------ #
def _pick_b_blk(B, d_feat, T, budget_bytes=4 << 20):
    """Largest batch-block whose f32 x-block fits the budget (conservative for
    v7x's 64 MiB VMEM); prefer >= 2 grid steps so both v7x TensorCores get work.
    Block last dim must stay a multiple of 128 unless it spans the full array."""
    divisors = [d for d in range(1, B + 1) if B % d == 0]
    ok = [d for d in divisors
          if (d == B or (d * T) % 128 == 0) and d * T * d_feat * 4 <= budget_bytes]
    if not ok:
        ok = [B]
    multi = [d for d in ok if B // d >= 2]
    return max(multi) if multi else max(ok)


def squeezed_tcm(x, params, *, kd1, cd1, dilation, d_feat, is_causal, b_blk=None):
    B, C, T = x.shape
    assert C == d_feat
    if is_causal:
        pad_left = (kd1 - 1) * dilation
    else:
        # PyTorch pads ((kd1-1)*d//2, (kd1-1)*d//2); the module only yields a
        # length-T output (needed for the residual add) when this is exact.
        assert ((kd1 - 1) * dilation) % 2 == 0, "non-causal requires even total pad"
        pad_left = (kd1 - 1) * dilation // 2

    (w_in, w_l, w_r, w_out,
     a_l, g_l, b_l, a_r, g_r, b_r, a_o, g_o, b_o) = params

    if b_blk is None:
        b_blk = _pick_b_blk(B, d_feat, T)
    assert B % b_blk == 0
    NB = b_blk * T
    grid = B // b_blk

    # Channel-major slab: (B, C, T) -> (C, B*T); columns [b*T,(b+1)*T) = batch b.
    x2 = jnp.transpose(x, (1, 0, 2)).reshape(d_feat, B * T)

    # bf16 weights; dilated-conv taps flattened so W_flat[:, k*cd1:(k+1)*cd1] = w[k].
    w_in_b = w_in.astype(jnp.bfloat16)
    w_l_b = jnp.transpose(w_l, (1, 0, 2)).reshape(cd1, kd1 * cd1).astype(jnp.bfloat16)
    w_r_b = jnp.transpose(w_r, (1, 0, 2)).reshape(cd1, kd1 * cd1).astype(jnp.bfloat16)
    w_out_b = w_out.astype(jnp.bfloat16)

    # Pack the nine (cd1, 1) PReLU/IN params into one lane-dense (cd1, 128) block.
    pvec = jnp.concatenate(
        [a_l, g_l, b_l, a_r, g_r, b_r, a_o, g_o, b_o], axis=1).astype(jnp.float32)
    pvec = jnp.pad(pvec, ((0, 0), (0, 128 - pvec.shape[1])))

    kernel = functools.partial(
        squeezed_tcm_kernel, cd1=cd1, kd1=kd1, dilation=dilation,
        pad_left=pad_left, T=T, B_blk=b_blk)

    def resident(a):          # whole array, same block every step -> stays in VMEM
        return pl.BlockSpec(a.shape, lambda i: (0, 0))

    grid_spec = pltpu.PrefetchScalarGridSpec(
        num_scalar_prefetch=0,
        grid=(grid,),
        in_specs=[
            pl.BlockSpec((d_feat, NB), lambda i: (0, i)),
            resident(w_in_b), resident(w_l_b), resident(w_r_b),
            resident(w_out_b), resident(pvec),
        ],
        out_specs=pl.BlockSpec((d_feat, NB), lambda i: (0, i)),
    )

    flops = 2 * B * T * (2 * d_feat * cd1 + 2 * kd1 * cd1 * cd1)
    bytes_accessed = (2 * 4 * B * d_feat * T
                      + 2 * (w_in_b.size + w_l_b.size + w_r_b.size + w_out_b.size)
                      + 4 * pvec.size)
    cost = pl.CostEstimate(flops=flops, transcendentals=2 * B * T * cd1,
                           bytes_accessed=bytes_accessed)

    out2 = pl.pallas_call(
        kernel,
        out_shape=jax.ShapeDtypeStruct((d_feat, B * T), x.dtype),
        grid_spec=grid_spec,
        compiler_params=pltpu.CompilerParams(dimension_semantics=("parallel",)),
        cost_estimate=cost,
    )(x2, w_in_b, w_l_b, w_r_b, w_out_b, pvec)

    # TODO(synk): for very long T (v7x's 64 MiB VMEM) additionally tile T and
    # switch InstanceNorm to a two-pass sum/sumsq accumulation across T tiles.
    return out2.reshape(d_feat, B, T).transpose(1, 0, 2)


# ----------------------- pure-JAX reference (for check) --------------------- #
def squeezed_tcm_ref(x, params, *, kd1, dilation, is_causal,
                     matmul_dtype=jnp.float32):
    (w_in, w_l, w_r, w_out,
     a_l, g_l, b_l, a_r, g_r, b_r, a_o, g_o, b_o) = params
    md = matmul_dtype

    def mm(w, v):
        return jnp.einsum('oi,bit->bot', w.astype(md), v.astype(md),
                          preferred_element_type=jnp.float32)

    def prelu(v, a):
        return jnp.where(v >= 0, v, a[None] * v)

    def inorm(v, g, b):
        m = v.mean(-1, keepdims=True)
        var = ((v - m) ** 2).mean(-1, keepdims=True)
        return (v - m) * lax.rsqrt(var + EPS) * g[None] + b[None]

    def dconv(v, w):
        T = v.shape[-1]
        if is_causal:
            pl_, pr_ = (kd1 - 1) * dilation, 0
        else:
            pl_ = pr_ = (kd1 - 1) * dilation // 2
        vp = jnp.pad(v, ((0, 0), (0, 0), (pl_, pr_)))
        out = jnp.zeros(v.shape, jnp.float32)
        for k in range(kd1):
            out = out + mm(w[k], vp[..., k * dilation:k * dilation + T])
        return out

    h = mm(w_in, x)
    left = dconv(inorm(prelu(h, a_l), g_l, b_l), w_l)
    right = jax.nn.sigmoid(dconv(inorm(prelu(h, a_r), g_r, b_r), w_r))
    g = left * right
    y = inorm(prelu(g, a_o), g_o, b_o)
    return mm(w_out, y) + x


# --------------------------------- main -------------------------------------- #
if __name__ == "__main__":
    B, d_feat, cd1, T = 4, 64, 32, 128
    kd1, dilation, is_causal = 3, 2, True

    key = jax.random.PRNGKey(0)
    ks = jax.random.split(key, 12)

    w_in = jax.random.normal(ks[0], (cd1, d_feat), jnp.float32) / jnp.sqrt(d_feat)
    w_l = jax.random.normal(ks[1], (kd1, cd1, cd1), jnp.float32) / jnp.sqrt(cd1 * kd1)
    w_r = jax.random.normal(ks[2], (kd1, cd1, cd1), jnp.float32) / jnp.sqrt(cd1 * kd1)
    w_out = jax.random.normal(ks[3], (d_feat, cd1), jnp.float32) / jnp.sqrt(cd1)

    a_l = jnp.full((cd1, 1), 0.25, jnp.float32)            # PReLU default init
    a_r = jnp.full((cd1, 1), 0.25, jnp.float32)
    a_o = jnp.full((cd1, 1), 0.25, jnp.float32)
    g_l = 1.0 + 0.1 * jax.random.normal(ks[4], (cd1, 1), jnp.float32)
    b_l = 0.1 * jax.random.normal(ks[5], (cd1, 1), jnp.float32)
    g_r = 1.0 + 0.1 * jax.random.normal(ks[6], (cd1, 1), jnp.float32)
    b_r = 0.1 * jax.random.normal(ks[7], (cd1, 1), jnp.float32)
    g_o = 1.0 + 0.1 * jax.random.normal(ks[8], (cd1, 1), jnp.float32)
    b_o = 0.1 * jax.random.normal(ks[9], (cd1, 1), jnp.float32)

    params = (w_in, w_l, w_r, w_out,
              a_l, g_l, b_l, a_r, g_r, b_r, a_o, g_o, b_o)

    x = jax.random.normal(ks[10], (B, d_feat, T), jnp.float32)

    out = squeezed_tcm(x, params, kd1=kd1, cd1=cd1, dilation=dilation,
                       d_feat=d_feat, is_causal=is_causal)
    out = jax.block_until_ready(out)
    assert out.shape == (B, d_feat, T)

    # Tight check against a reference using the same bf16-operand matmul
    # precision (validates the kernel structure: padding, gating, norms,
    # residual), plus a loose check against the full-f32 reference (validates
    # semantics vs the PyTorch module up to bf16 matmul precision).
    ref_bf = squeezed_tcm_ref(x, params, kd1=kd1, dilation=dilation,
                              is_causal=is_causal, matmul_dtype=jnp.bfloat16)
    ref_fp = squeezed_tcm_ref(x, params, kd1=kd1, dilation=dilation,
                              is_causal=is_causal, matmul_dtype=jnp.float32)
    assert jnp.allclose(out, ref_bf, rtol=2e-2, atol=2e-2), float(
        jnp.max(jnp.abs(out - ref_bf)))
    assert jnp.allclose(out, ref_fp, rtol=1e-1, atol=1e-1), float(
        jnp.max(jnp.abs(out - ref_fp)))

    print("KERNEL_OK")
</pallas_src>

<mosaic_0001>
module attributes {stable_mosaic.version = 11 : i64} {
  func.func @squeezed_tcm_kernel(%arg0: i32, %arg1: memref<64x256xf32, #tpu.memory_space<vmem>>, %arg2: memref<32x64xbf16, #tpu.memory_space<vmem>>, %arg3: memref<32x96xbf16, #tpu.memory_space<vmem>>, %arg4: memref<32x96xbf16, #tpu.memory_space<vmem>>, %arg5: memref<64x32xbf16, #tpu.memory_space<vmem>>, %arg6: memref<32x128xf32, #tpu.memory_space<vmem>>, %arg7: memref<64x256xf32, #tpu.memory_space<vmem>>) attributes {dimension_semantics = [#tpu.dimension_semantics<parallel>], iteration_bounds = array<i64: 2>, scalar_prefetch = 0 : i64, scratch_operands = 0 : i64, tpu.core_type = #tpu.core_type<tc>, window_params = [{transform_indices = @transform_0, window_bounds = array<i64: 64, 256>}, {pipeline_mode = #tpu.pipeline_mode<synchronous>, transform_indices = @transform_1, window_bounds = array<i64: 32, 64>}, {pipeline_mode = #tpu.pipeline_mode<synchronous>, transform_indices = @transform_2, window_bounds = array<i64: 32, 96>}, {pipeline_mode = #tpu.pipeline_mode<synchronous>, transform_indices = @transform_3, window_bounds = array<i64: 32, 96>}, {pipeline_mode = #tpu.pipeline_mode<synchronous>, transform_indices = @transform_4, window_bounds = array<i64: 64, 32>}, {pipeline_mode = #tpu.pipeline_mode<synchronous>, transform_indices = @transform_5, window_bounds = array<i64: 32, 128>}, {transform_indices = @transform_6, window_bounds = array<i64: 64, 256>}]} {
    %c0 = arith.constant 0 : index
    %c0_0 = arith.constant 0 : index
    %0 = vector.load %arg1[%c0, %c0_0] : memref<64x256xf32, #tpu.memory_space<vmem>>, vector<64x256xf32>
    %c0_1 = arith.constant 0 : index
    %c0_2 = arith.constant 0 : index
    %1 = vector.load %arg6[%c0_1, %c0_2] : memref<32x128xf32, #tpu.memory_space<vmem>>, vector<32x128xf32>
    %2 = vector.extract_strided_slice %1 {offsets = [0, 0], sizes = [32, 1], strides = [1, 1]} : vector<32x128xf32> to vector<32x1xf32>
    %3 = vector.extract_strided_slice %1 {offsets = [0, 1], sizes = [32, 1], strides = [1, 1]} : vector<32x128xf32> to vector<32x1xf32>
    %4 = vector.extract_strided_slice %1 {offsets = [0, 2], sizes = [32, 1], strides = [1, 1]} : vector<32x128xf32> to vector<32x1xf32>
    %5 = vector.extract_strided_slice %1 {offsets = [0, 3], sizes = [32, 1], strides = [1, 1]} : vector<32x128xf32> to vector<32x1xf32>
    %6 = vector.extract_strided_slice %1 {offsets = [0, 4], sizes = [32, 1], strides = [1, 1]} : vector<32x128xf32> to vector<32x1xf32>
    %7 = vector.extract_strided_slice %1 {offsets = [0, 5], sizes = [32, 1], strides = [1, 1]} : vector<32x128xf32> to vector<32x1xf32>
    %8 = vector.extract_strided_slice %1 {offsets = [0, 6], sizes = [32, 1], strides = [1, 1]} : vector<32x128xf32> to vector<32x1xf32>
    %9 = vector.extract_strided_slice %1 {offsets = [0, 7], sizes = [32, 1], strides = [1, 1]} : vector<32x128xf32> to vector<32x1xf32>
    %10 = vector.extract_strided_slice %1 {offsets = [0, 8], sizes = [32, 1], strides = [1, 1]} : vector<32x128xf32> to vector<32x1xf32>
    %c0_3 = arith.constant 0 : index
    %c0_4 = arith.constant 0 : index
    %11 = vector.load %arg2[%c0_3, %c0_4] : memref<32x64xbf16, #tpu.memory_space<vmem>>, vector<32x64xbf16>
    %12 = arith.truncf %0 : vector<64x256xf32> to vector<64x256xbf16>
    %cst = arith.constant dense<0.000000e+00> : vector<32x256xf32>
    %13 = tpu.matmul %11, %12, %cst {dimension_numbers = #tpu.dot_dimension_numbers<[1], [0], [0], [1], [0, 0, 1, 1], [], []>} : vector<32x64xbf16>, vector<64x256xbf16>, vector<32x256xf32> -> vector<32x256xf32>
    %14 = tpu.iota {dimensions = array<i32: 1>} : vector<32x128xi32>
    %15 = tpu.concatenate %14, %14 in 1 : vector<32x128xi32>, vector<32x128xi32> -> vector<32x256xi32>
    %c4_i32 = arith.constant 4 : i32
    %16 = vector.broadcast %c4_i32 : i32 to vector<32x256xi32>
    %17 = arith.cmpi sge, %15, %16 : vector<32x256xi32>
    %c2_i32 = arith.constant 2 : i32
    %18 = vector.broadcast %c2_i32 : i32 to vector<32x256xi32>
    %19 = arith.cmpi sge, %15, %18 : vector<32x256xi32>
    %cst_5 = arith.constant 0.000000e+00 : f32
    %20 = vector.broadcast %cst_5 : f32 to vector<32x256xf32>
    %21 = arith.cmpf oge, %13, %20 : vector<32x256xf32>
    %22 = vector.broadcast %2 : vector<32x1xf32> to vector<32x256xf32>
    %23 = arith.mulf %22, %13 : vector<32x256xf32>
    %24 = arith.select %21, %13, %23 : vector<32x256xi1>, vector<32x256xf32>
    %25 = vector.extract_strided_slice %24 {offsets = [0, 0], sizes = [32, 128], strides = [1, 1]} : vector<32x256xf32> to vector<32x128xf32>
    %cst_6 = arith.constant dense<0.000000e+00> : vector<32xf32>
    %26 = vector.multi_reduction <add>, %25, %cst_6 [1] : vector<32x128xf32> to vector<32xf32>
    %27 = vector.shape_cast %26 : vector<32xf32> to vector<32x1xf32>
    %cst_7 = arith.constant 1.280000e+02 : f32
    %28 = vector.broadcast %cst_7 : f32 to vector<32x1xf32>
    %29 = arith.divf %27, %28 : vector<32x1xf32>
    %30 = vector.broadcast %29 : vector<32x1xf32> to vector<32x128xf32>
    %31 = arith.subf %25, %30 : vector<32x128xf32>
    %32 = arith.mulf %31, %31 : vector<32x128xf32>
    %cst_8 = arith.constant dense<0.000000e+00> : vector<32xf32>
    %33 = vector.multi_reduction <add>, %32, %cst_8 [1] : vector<32x128xf32> to vector<32xf32>
    %34 = vector.shape_cast %33 : vector<32xf32> to vector<32x1xf32>
    %cst_9 = arith.constant 1.280000e+02 : f32
    %35 = vector.broadcast %cst_9 : f32 to vector<32x1xf32>
    %36 = arith.divf %34, %35 : vector<32x1xf32>
    %37 = vector.broadcast %29 : vector<32x1xf32> to vector<32x128xf32>
    %38 = arith.subf %25, %37 : vector<32x128xf32>
    %cst_10 = arith.constant 9.99999974E-6 : f32
    %39 = vector.broadcast %cst_10 : f32 to vector<32x1xf32>
    %40 = arith.addf %36, %39 : vector<32x1xf32>
    %41 = math.rsqrt %40 : vector<32x1xf32>
    %42 = vector.broadcast %41 : vector<32x1xf32> to vector<32x128xf32>
    %43 = arith.mulf %38, %42 : vector<32x128xf32>
    %44 = vector.extract_strided_slice %24 {offsets = [0, 128], sizes = [32, 128], strides = [1, 1]} : vector<32x256xf32> to vector<32x128xf32>
    %cst_11 = arith.constant dense<0.000000e+00> : vector<32xf32>
    %45 = vector.multi_reduction <add>, %44, %cst_11 [1] : vector<32x128xf32> to vector<32xf32>
    %46 = vector.shape_cast %45 : vector<32xf32> to vector<32x1xf32>
    %cst_12 = arith.constant 1.280000e+02 : f32
    %47 = vector.broadcast %cst_12 : f32 to vector<32x1xf32>
    %48 = arith.divf %46, %47 : vector<32x1xf32>
    %49 = vector.broadcast %48 : vector<32x1xf32> to vector<32x128xf32>
    %50 = arith.subf %44, %49 : vector<32x128xf32>
    %51 = arith.mulf %50, %50 : vector<32x128xf32>
    %cst_13 = arith.constant dense<0.000000e+00> : vector<32xf32>
    %52 = vector.multi_reduction <add>, %51, %cst_13 [1] : vector<32x128xf32> to vector<32xf32>
    %53 = vector.shape_cast %52 : vector<32xf32> to vector<32x1xf32>
    %cst_14 = arith.constant 1.280000e+02 : f32
    %54 = vector.broadcast %cst_14 : f32 to vector<32x1xf32>
    %55 = arith.divf %53, %54 : vector<32x1xf32>
    %56 = vector.broadcast %48 : vector<32x1xf32> to vector<32x128xf32>
    %57 = arith.subf %44, %56 : vector<32x128xf32>
    %cst_15 = arith.constant 9.99999974E-6 : f32
    %58 = vector.broadcast %cst_15 : f32 to vector<32x1xf32>
    %59 = arith.addf %55, %58 : vector<32x1xf32>
    %60 = math.rsqrt %59 : vector<32x1xf32>
    %61 = vector.broadcast %60 : vector<32x1xf32> to vector<32x128xf32>
    %62 = arith.mulf %57, %61 : vector<32x128xf32>
    %63 = tpu.concatenate %43, %62 in 1 : vector<32x128xf32>, vector<32x128xf32> -> vector<32x256xf32>
    %64 = vector.broadcast %3 : vector<32x1xf32> to vector<32x256xf32>
    %65 = arith.mulf %63, %64 : vector<32x256xf32>
    %66 = vector.broadcast %4 : vector<32x1xf32> to vector<32x256xf32>
    %67 = arith.addf %65, %66 : vector<32x256xf32>
    %68 = vector.extract_strided_slice %67 {offsets = [0, 252], sizes = [32, 4], strides = [1, 1]} : vector<32x256xf32> to vector<32x4xf32>
    %69 = vector.extract_strided_slice %67 {offsets = [0, 0], sizes = [32, 252], strides = [1, 1]} : vector<32x256xf32> to vector<32x252xf32>
    %70 = tpu.concatenate %68, %69 in 1 : vector<32x4xf32>, vector<32x252xf32> -> vector<32x256xf32>
    %cst_16 = arith.constant 0.000000e+00 : f32
    %71 = vector.broadcast %cst_16 : f32 to vector<32x256xf32>
    %72 = arith.select %17, %70, %71 : vector<32x256xi1>, vector<32x256xf32>
    %73 = vector.extract_strided_slice %67 {offsets = [0, 254], sizes = [32, 2], strides = [1, 1]} : vector<32x256xf32> to vector<32x2xf32>
    %74 = vector.extract_strided_slice %67 {offsets = [0, 0], sizes = [32, 254], strides = [1, 1]} : vector<32x256xf32> to vector<32x254xf32>
    %75 = tpu.concatenate %73, %74 in 1 : vector<32x2xf32>, vector<32x254xf32> -> vector<32x256xf32>
    %cst_17 = arith.constant 0.000000e+00 : f32
    %76 = vector.broadcast %cst_17 : f32 to vector<32x256xf32>
    %77 = arith.select %19, %75, %76 : vector<32x256xi1>, vector<32x256xf32>
    %78 = tpu.concatenate %72, %77, %67 in 0 : vector<32x256xf32>, vector<32x256xf32>, vector<32x256xf32> -> vector<96x256xf32>
    %c0_18 = arith.constant 0 : index
    %c0_19 = arith.constant 0 : index
    %79 = vector.load %arg3[%c0_18, %c0_19] : memref<32x96xbf16, #tpu.memory_space<vmem>>, vector<32x96xbf16>
    %80 = arith.truncf %78 : vector<96x256xf32> to vector<96x256xbf16>
    %cst_20 = arith.constant dense<0.000000e+00> : vector<32x256xf32>
    %81 = tpu.matmul %79, %80, %cst_20 {dimension_numbers = #tpu.dot_dimension_numbers<[1], [0], [0], [1], [0, 0, 1, 1], [], []>} : vector<32x96xbf16>, vector<96x256xbf16>, vector<32x256xf32> -> vector<32x256xf32>
    %cst_21 = arith.constant 0.000000e+00 : f32
    %82 = vector.broadcast %cst_21 : f32 to vector<32x256xf32>
    %83 = arith.cmpf oge, %13, %82 : vector<32x256xf32>
    %84 = vector.broadcast %5 : vector<32x1xf32> to vector<32x256xf32>
    %85 = arith.mulf %84, %13 : vector<32x256xf32>
    %86 = arith.select %83, %13, %85 : vector<32x256xi1>, vector<32x256xf32>
    %87 = vector.extract_strided_slice %86 {offsets = [0, 0], sizes = [32, 128], strides = [1, 1]} : vector<32x256xf32> to vector<32x128xf32>
    %cst_22 = arith.constant dense<0.000000e+00> : vector<32xf32>
    %88 = vector.multi_reduction <add>, %87, %cst_22 [1] : vector<32x128xf32> to vector<32xf32>
    %89 = vector.shape_cast %88 : vector<32xf32> to vector<32x1xf32>
    %cst_23 = arith.constant 1.280000e+02 : f32
    %90 = vector.broadcast %cst_23 : f32 to vector<32x1xf32>
    %91 = arith.divf %89, %90 : vector<32x1xf32>
    %92 = vector.broadcast %91 : vector<32x1xf32> to vector<32x128xf32>
    %93 = arith.subf %87, %92 : vector<32x128xf32>
    %94 = arith.mulf %93, %93 : vector<32x128xf32>
    %cst_24 = arith.constant dense<0.000000e+00> : vector<32xf32>
    %95 = vector.multi_reduction <add>, %94, %cst_24 [1] : vector<32x128xf32> to vector<32xf32>
    %96 = vector.shape_cast %95 : vector<32xf32> to vector<32x1xf32>
    %cst_25 = arith.constant 1.280000e+02 : f32
    %97 = vector.broadcast %cst_25 : f32 to vector<32x1xf32>
    %98 = arith.divf %96, %97 : vector<32x1xf32>
    %99 = vector.broadcast %91 : vector<32x1xf32> to vector<32x128xf32>
    %100 = arith.subf %87, %99 : vector<32x128xf32>
    %cst_26 = arith.constant 9.99999974E-6 : f32
    %101 = vector.broadcast %cst_26 : f32 to vector<32x1xf32>
    %102 = arith.addf %98, %101 : vector<32x1xf32>
    %103 = math.rsqrt %102 : vector<32x1xf32>
    %104 = vector.broadcast %103 : vector<32x1xf32> to vector<32x128xf32>
    %105 = arith.mulf %100, %104 : vector<32x128xf32>
    %106 = vector.extract_strided_slice %86 {offsets = [0, 128], sizes = [32, 128], strides = [1, 1]} : vector<32x256xf32> to vector<32x128xf32>
    %cst_27 = arith.constant dense<0.000000e+00> : vector<32xf32>
    %107 = vector.multi_reduction <add>, %106, %cst_27 [1] : vector<32x128xf32> to vector<32xf32>
    %108 = vector.shape_cast %107 : vector<32xf32> to vector<32x1xf32>
    %cst_28 = arith.constant 1.280000e+02 : f32
    %109 = vector.broadcast %cst_28 : f32 to vector<32x1xf32>
    %110 = arith.divf %108, %109 : vector<32x1xf32>
    %111 = vector.broadcast %110 : vector<32x1xf32> to vector<32x128xf32>
    %112 = arith.subf %106, %111 : vector<32x128xf32>
    %113 = arith.mulf %112, %112 : vector<32x128xf32>
    %cst_29 = arith.constant dense<0.000000e+00> : vector<32xf32>
    %114 = vector.multi_reduction <add>, %113, %cst_29 [1] : vector<32x128xf32> to vector<32xf32>
    %115 = vector.shape_cast %114 : vector<32xf32> to vector<32x1xf32>
    %cst_30 = arith.constant 1.280000e+02 : f32
    %116 = vector.broadcast %cst_30 : f32 to vector<32x1xf32>
    %117 = arith.divf %115, %116 : vector<32x1xf32>
    %118 = vector.broadcast %110 : vector<32x1xf32> to vector<32x128xf32>
    %119 = arith.subf %106, %118 : vector<32x128xf32>
    %cst_31 = arith.constant 9.99999974E-6 : f32
    %120 = vector.broadcast %cst_31 : f32 to vector<32x1xf32>
    %121 = arith.addf %117, %120 : vector<32x1xf32>
    %122 = math.rsqrt %121 : vector<32x1xf32>
    %123 = vector.broadcast %122 : vector<32x1xf32> to vector<32x128xf32>
    %124 = arith.mulf %119, %123 : vector<32x128xf32>
    %125 = tpu.concatenate %105, %124 in 1 : vector<32x128xf32>, vector<32x128xf32> -> vector<32x256xf32>
    %126 = vector.broadcast %6 : vector<32x1xf32> to vector<32x256xf32>
    %127 = arith.mulf %125, %126 : vector<32x256xf32>
    %128 = vector.broadcast %7 : vector<32x1xf32> to vector<32x256xf32>
    %129 = arith.addf %127, %128 : vector<32x256xf32>
    %130 = vector.extract_strided_slice %129 {offsets = [0, 252], sizes = [32, 4], strides = [1, 1]} : vector<32x256xf32> to vector<32x4xf32>
    %131 = vector.extract_strided_slice %129 {offsets = [0, 0], sizes = [32, 252], strides = [1, 1]} : vector<32x256xf32> to vector<32x252xf32>
    %132 = tpu.concatenate %130, %131 in 1 : vector<32x4xf32>, vector<32x252xf32> -> vector<32x256xf32>
    %cst_32 = arith.constant 0.000000e+00 : f32
    %133 = vector.broadcast %cst_32 : f32 to vector<32x256xf32>
    %134 = arith.select %17, %132, %133 : vector<32x256xi1>, vector<32x256xf32>
    %135 = vector.extract_strided_slice %129 {offsets = [0, 254], sizes = [32, 2], strides = [1, 1]} : vector<32x256xf32> to vector<32x2xf32>
    %136 = vector.extract_strided_slice %129 {offsets = [0, 0], sizes = [32, 254], strides = [1, 1]} : vector<32x256xf32> to vector<32x254xf32>
    %137 = tpu.concatenate %135, %136 in 1 : vector<32x2xf32>, vector<32x254xf32> -> vector<32x256xf32>
    %cst_33 = arith.constant 0.000000e+00 : f32
    %138 = vector.broadcast %cst_33 : f32 to vector<32x256xf32>
    %139 = arith.select %19, %137, %138 : vector<32x256xi1>, vector<32x256xf32>
    %140 = tpu.concatenate %134, %139, %129 in 0 : vector<32x256xf32>, vector<32x256xf32>, vector<32x256xf32> -> vector<96x256xf32>
    %c0_34 = arith.constant 0 : index
    %c0_35 = arith.constant 0 : index
    %141 = vector.load %arg4[%c0_34, %c0_35] : memref<32x96xbf16, #tpu.memory_space<vmem>>, vector<32x96xbf16>
    %142 = arith.truncf %140 : vector<96x256xf32> to vector<96x256xbf16>
    %cst_36 = arith.constant dense<0.000000e+00> : vector<32x256xf32>
    %143 = tpu.matmul %141, %142, %cst_36 {dimension_numbers = #tpu.dot_dimension_numbers<[1], [0], [0], [1], [0, 0, 1, 1], [], []>} : vector<32x96xbf16>, vector<96x256xbf16>, vector<32x256xf32> -> vector<32x256xf32>
    %144 = arith.negf %143 : vector<32x256xf32>
    %145 = math.exp %144 : vector<32x256xf32>
    %cst_37 = arith.constant 1.000000e+00 : f32
    %146 = vector.broadcast %cst_37 : f32 to vector<32x256xf32>
    %147 = arith.addf %146, %145 : vector<32x256xf32>
    %148 = arith.divf %146, %147 : vector<32x256xf32>
    %149 = arith.mulf %81, %148 : vector<32x256xf32>
    %cst_38 = arith.constant 0.000000e+00 : f32
    %150 = vector.broadcast %cst_38 : f32 to vector<32x256xf32>
    %151 = arith.cmpf oge, %149, %150 : vector<32x256xf32>
    %152 = vector.broadcast %8 : vector<32x1xf32> to vector<32x256xf32>
    %153 = arith.mulf %152, %149 : vector<32x256xf32>
    %154 = arith.select %151, %149, %153 : vector<32x256xi1>, vector<32x256xf32>
    %155 = vector.extract_strided_slice %154 {offsets = [0, 0], sizes = [32, 128], strides = [1, 1]} : vector<32x256xf32> to vector<32x128xf32>
    %cst_39 = arith.constant dense<0.000000e+00> : vector<32xf32>
    %156 = vector.multi_reduction <add>, %155, %cst_39 [1] : vector<32x128xf32> to vector<32xf32>
    %157 = vector.shape_cast %156 : vector<32xf32> to vector<32x1xf32>
    %cst_40 = arith.constant 1.280000e+02 : f32
    %158 = vector.broadcast %cst_40 : f32 to vector<32x1xf32>
    %159 = arith.divf %157, %158 : vector<32x1xf32>
    %160 = vector.broadcast %159 : vector<32x1xf32> to vector<32x128xf32>
    %161 = arith.subf %155, %160 : vector<32x128xf32>
    %162 = arith.mulf %161, %161 : vector<32x128xf32>
    %cst_41 = arith.constant dense<0.000000e+00> : vector<32xf32>
    %163 = vector.multi_reduction <add>, %162, %cst_41 [1] : vector<32x128xf32> to vector<32xf32>
    %164 = vector.shape_cast %163 : vector<32xf32> to vector<32x1xf32>
    %cst_42 = arith.constant 1.280000e+02 : f32
    %165 = vector.broadcast %cst_42 : f32 to vector<32x1xf32>
    %166 = arith.divf %164, %165 : vector<32x1xf32>
    %167 = vector.broadcast %159 : vector<32x1xf32> to vector<32x128xf32>
    %168 = arith.subf %155, %167 : vector<32x128xf32>
    %cst_43 = arith.constant 9.99999974E-6 : f32
    %169 = vector.broadcast %cst_43 : f32 to vector<32x1xf32>
    %170 = arith.addf %166, %169 : vector<32x1xf32>
    %171 = math.rsqrt %170 : vector<32x1xf32>
    %172 = vector.broadcast %171 : vector<32x1xf32> to vector<32x128xf32>
    %173 = arith.mulf %168, %172 : vector<32x128xf32>
    %174 = vector.extract_strided_slice %154 {offsets = [0, 128], sizes = [32, 128], strides = [1, 1]} : vector<32x256xf32> to vector<32x128xf32>
    %cst_44 = arith.constant dense<0.000000e+00> : vector<32xf32>
    %175 = vector.multi_reduction <add>, %174, %cst_44 [1] : vector<32x128xf32> to vector<32xf32>
    %176 = vector.shape_cast %175 : vector<32xf32> to vector<32x1xf32>
    %cst_45 = arith.constant 1.280000e+02 : f32
    %177 = vector.broadcast %cst_45 : f32 to vector<32x1xf32>
    %178 = arith.divf %176, %177 : vector<32x1xf32>
    %179 = vector.broadcast %178 : vector<32x1xf32> to vector<32x128xf32>
    %180 = arith.subf %174, %179 : vector<32x128xf32>
    %181 = arith.mulf %180, %180 : vector<32x128xf32>
    %cst_46 = arith.constant dense<0.000000e+00> : vector<32xf32>
    %182 = vector.multi_reduction <add>, %181, %cst_46 [1] : vector<32x128xf32> to vector<32xf32>
    %183 = vector.shape_cast %182 : vector<32xf32> to vector<32x1xf32>
    %cst_47 = arith.constant 1.280000e+02 : f32
    %184 = vector.broadcast %cst_47 : f32 to vector<32x1xf32>
    %185 = arith.divf %183, %184 : vector<32x1xf32>
    %186 = vector.broadcast %178 : vector<32x1xf32> to vector<32x128xf32>
    %187 = arith.subf %174, %186 : vector<32x128xf32>
    %cst_48 = arith.constant 9.99999974E-6 : f32
    %188 = vector.broadcast %cst_48 : f32 to vector<32x1xf32>
    %189 = arith.addf %185, %188 : vector<32x1xf32>
    %190 = math.rsqrt %189 : vector<32x1xf32>
    %191 = vector.broadcast %190 : vector<32x1xf32> to vector<32x128xf32>
    %192 = arith.mulf %187, %191 : vector<32x128xf32>
    %193 = tpu.concatenate %173, %192 in 1 : vector<32x128xf32>, vector<32x128xf32> -> vector<32x256xf32>
    %194 = vector.broadcast %9 : vector<32x1xf32> to vector<32x256xf32>
    %195 = arith.mulf %193, %194 : vector<32x256xf32>
    %196 = vector.broadcast %10 : vector<32x1xf32> to vector<32x256xf32>
    %197 = arith.addf %195, %196 : vector<32x256xf32>
    %c0_49 = arith.constant 0 : index
    %c0_50 = arith.constant 0 : index
    %198 = vector.load %arg5[%c0_49, %c0_50] : memref<64x32xbf16, #tpu.memory_space<vmem>>, vector<64x32xbf16>
    %199 = arith.truncf %197 : vector<32x256xf32> to vector<32x256xbf16>
    %cst_51 = arith.constant dense<0.000000e+00> : vector<64x256xf32>
    %200 = tpu.matmul %198, %199, %cst_51 {dimension_numbers = #tpu.dot_dimension_numbers<[1], [0], [0], [1], [0, 0, 1, 1], [], []>} : vector<64x32xbf16>, vector<32x256xbf16>, vector<64x256xf32> -> vector<64x256xf32>
    %201 = arith.addf %200, %0 : vector<64x256xf32>
    %c0_52 = arith.constant 0 : index
    %c0_53 = arith.constant 0 : index
    %202 = vector.load %arg7[%c0_52, %c0_53] : memref<64x256xf32, #tpu.memory_space<vmem>>, vector<64x256xf32>
    tpu.vector_store %arg7[%c0_52, %c0_53], %201 {strides = array<i32>} : memref<64x256xf32, #tpu.memory_space<vmem>>, vector<64x256xf32>,
    return
  }
  func.func @transform_0(%arg0: i32) -> (i32, i32) {
    %c0_i32 = arith.constant 0 : i32
    %c0_i32_0 = arith.constant 0 : i32
    return %c0_i32, %arg0 : i32, i32
  }
  func.func @transform_1(%arg0: i32) -> (i32, i32) {
    %c0_i32 = arith.constant 0 : i32
    %c0_i32_0 = arith.constant 0 : i32
    %c0_i32_1 = arith.constant 0 : i32
    return %c0_i32, %c0_i32_0 : i32, i32
  }
  func.func @transform_2(%arg0: i32) -> (i32, i32) {
    %c0_i32 = arith.constant 0 : i32
    %c0_i32_0 = arith.constant 0 : i32
    %c0_i32_1 = arith.constant 0 : i32
    return %c0_i32, %c0_i32_0 : i32, i32
  }
  func.func @transform_3(%arg0: i32) -> (i32, i32) {
    %c0_i32 = arith.constant 0 : i32
    %c0_i32_0 = arith.constant 0 : i32
    %c0_i32_1 = arith.constant 0 : i32
    return %c0_i32, %c0_i32_0 : i32, i32
  }
  func.func @transform_4(%arg0: i32) -> (i32, i32) {
    %c0_i32 = arith.constant 0 : i32
    %c0_i32_0 = arith.constant 0 : i32
    %c0_i32_1 = arith.constant 0 : i32
    return %c0_i32, %c0_i32_0 : i32, i32
  }
  func.func @transform_5(%arg0: i32) -> (i32, i32) {
    %c0_i32 = arith.constant 0 : i32
    %c0_i32_0 = arith.constant 0 : i32
    %c0_i32_1 = arith.constant 0 : i32
    return %c0_i32, %c0_i32_0 : i32, i32
  }
  func.func @transform_6(%arg0: i32) -> (i32, i32) {
    %c0_i32 = arith.constant 0 : i32
    %c0_i32_0 = arith.constant 0 : i32
    return %c0_i32, %arg0 : i32, i32
  }
}

</mosaic_0001>

<bundles_post_ra>
// kernel: tpu_custom_call.1
= control target key start
LH: loop header
LB: loop body
LE: loop exit
PB: predicated region body
PF: predicated region fallthrough
CT: control target
= control target key end

     0   :  { %s2937_s0 = inlined_call_operand.hbm [shape: f32[64,512], index: 0, kind: input, shape index: {}]   ;;  %s2938_s1 = inlined_call_operand.vmem [shape: bf16[32,64], index: 1, kind: input, shape index: {}]   ;;  %s2939_s2 = inlined_call_operand.hbm [shape: bf16[32,96], index: 2, kind: input, shape index: {}]   ;;  %s2940_s3 = inlined_call_operand.hbm [shape: bf16[32,96], index: 3, kind: input, shape index: {}]   ;;  %s2941_s4 = inlined_call_operand.vmem [shape: bf16[64,32], index: 4, kind: input, shape index: {}]   ;;  %s2942_s5 = inlined_call_operand.vmem [shape: f32[32,128], index: 5, kind: input, shape index: {}]   ;;  %s2943_s6 = inlined_call_operand.hbm [shape: f32[64,512], index: 6, kind: output, shape index: {}]  }
   0x1   :  { %2948 = sst [smem:[#allocation12_spill]] %s2939_s2 }
   0x2   :  { %11 = vsyncpa [#allocation3], 0 }
   0x3   :  { %13 = vsyncpa [#allocation3 + $0x1], 0 }
   0x4   :  { %14 = vsyncpa [#allocation6], 0 }
   0x5   :  { %15 = vsyncpa [#allocation4], 0 }
   0x6   :  { %17 = vsyncpa [#allocation4 + $0x1], 0  ;;  %s2201_s21 = smov 0   ;;  %s2203_s22 = smov 0  }
   0x7   :  { %s2205_s23 = smov 0   ;;  %s2207_s24 = smov 0  }
   0x8 LB: > { %s2222_s25 = sadd.s32 4294967295, %s2141_s24   ;;  %s1594_s26 = sadd.s32 4294967294, %s2141_s24   ;;  %s2141_s24 = sphi %s2207_s24, %s2971_s24   ;;  %s2137_s23 = sphi %s2205_s23, %s2970_s23   ;;  %s2133_s22 = sphi %s2203_s22, %s2969_s22   ;;  %s2129_s21 = sphi %s2201_s21, %s2968_s21  }
   0x9   : > { %s2226_s27 = sadd.s32 1, %s2141_s24   ;;  %s30_s28 = sadd.s32 1, %s2137_s23 }
   0xa   : > { %s27_s29 = ssub.s32 %s2141_s24, %s2226_s27  ;;  %p37_p0 = scmp.ne.s32.totalorder %s2137_s23, %s2133_s22 }
   0xb   : > { %p28_p1 = scmp.eq.s32.totalorder %s27_s29, 0  ;;  %p38_p2 = scmp.eq.s32.totalorder %s2141_s24, 0 }
   0xc   : > { %p43_p3 = scmp.ne.s32.totalorder %s2133_s22, %s2129_s21  ;;  %p2945_p4 = scmp.eq.s32.totalorder %s2222_s25, 0 }
   0xd   : > { %s2238_s30 = scalar_select %p28_p1, %s2137_s23, %s30_s28  }
   0xe   : > { %p2240_p5 = por %p38_p2, %p37_p0  ;;  %p2246_p6 = por %p2945_p4, %p43_p3 }
   0xf   : > { %p172_p7 = scmp.eq.s32.totalorder %s2222_s25, 1  ;;  %p178_p8 = scmp.eq.s32.totalorder %s1594_s26, 1 }
  0x10   : > { %s2950_s8 = scalar_select %p2246_p6, 1, 0 }
  0x11   : > { %p1595_p9 = scmp.ge.s32.totalorder %s2141_s24, 1  ;;  %p185_p10 = scmp.lt.s32.totalorder %s2141_s24, 3 }
  0x12   : > { %p2253_p11 = por %p172_p7, %p37_p0  ;;  %p2257_p12 = por %p178_p8, %p43_p3 }
  0x13   : > { %p2261_p13 = pnand %p1595_p9, %p185_p10  ;;  %s2143_s12 = smov [#allocation5]  }
  0x14   : > { %s2951_s9 = scalar_select %p2253_p11, 1, 0 }
  0x15   : > { %s2952_s10 = scalar_select %p2257_p12, 1, 0 }
  0x16   : > { %s2953_s11 = scalar_select %p2261_p13, 1, 0 }
  0x17   : > { %p1706_p1 = pneg %p2261_p13  ;;  %s200_s13 = sshll.u32 %s2143_s12, 4  ;;  %s201_s13 = int_to_ptr.vmem [resolvable:$true] %s200_s13 }
  0x18   : > { %p1723_p3 = scmp.lt.s32.totalorder %s2141_s24, 2  ;;  %s2144_s15 = smov [#allocation7]  }
  0x19   : > { %p2269_p2 = pnand %p1706_p1, %p2945_p4  ;;  %s213_s16 = sshll.u32 %s2144_s15, 4  ;;  %s214_s16 = int_to_ptr.vmem [resolvable:$true] %s213_s16 }
  0x1a   : > { %s2004_s17 = scalar_lea.vmem %s201_s13, 256  ;;  %p2012_p12 = scmp.lt.s32.totalorder %s201_s13, %s201_s13 }
  0x1b   : > { %p1995_p7 = pneg %p2269_p2  ;;  %p2005_p8 = scmp.ne.s32.totalorder %s201_s13, %s2004_s17 }
  0x1c   : > { %p2013_p11 = scmp.lt.s32.totalorder %s2004_s17, %s2004_s17 }
  0x1d   : > { %p2007_p9 = pnand %p2005_p8, %p1995_p7 }
  0x1e   : > { %p2014_p1 = por %p2013_p11, %p2012_p12 }
  0x1f   : > { %p2008_p10 = pneg %p2007_p9 }
  0x21   : > { %p2015_p4 = pnand %p2014_p1, %p2008_p10 }
  0x23   : > { %2018 = shalt.err (!%p2015_p4)
}
  0x24   : > { %s2145_s18 = smov 64   ;;  %s2146_s19 = smov 4  }
  0x25   : > { %s2955_s2 = sld [smem:[#allocation12_spill]]  ;;  %p2289_p8 = pnand %p1723_p3, %p2240_p5 }
  0x26   : > { %s2030_s29 = scalar_lea.vmem %s214_s16, 256  ;;  %p2038_p9 = scmp.lt.s32.totalorder %s214_s16, %s214_s16 }
  0x27   : > { %p2031_p4 = scmp.ne.s32.totalorder %s214_s16, %s2030_s29  ;;  %p2039_p10 = scmp.lt.s32.totalorder %s2030_s29, %s2030_s29 }
  0x29   : > { %p2033_p11 = pnand %p2031_p4, %p1995_p7  ;;  %p2040_p1 = por %p2039_p10, %p2038_p9 }
  0x2b   : > { %1709 = dma.hbm_to_vmem [thread:$0]  (!%p2269_p2), %s2955_s2, 256, %s201_s13, [#allocation6], %s2145_s18, %s2145_s18, %s2146_s19  }
  0x2c   : > { %p2034_p12 = pneg %p2033_p11 }
  0x2e   : > { %p2041_p0 = pnand %p2040_p1, %p2034_p12 }
  0x30   : > { %2044 = shalt.err (!%p2041_p0)
}
  0x31   : > { %1712 = dma.hbm_to_vmem [thread:$0]  (!%p2269_p2), %s2940_s3, 256, %s214_s16, [#allocation6], %s2145_s18, %s2145_s18, %s2146_s19  }
  0x32   : > { %s233_s13 = sand.u32 1, %s2137_s23   ;;  %s1688_s17 = sshll.u32 %s2141_s24, 8 }
  0x33   : > { %s1599_s15 = sshll.u32 %s233_s13, 7  ;;  %s2306_s2 = scalar_lea.hbm %s2937_s0, %s1688_s17 }
  0x34   : > { %s237_s29 = scalar_lea.vmem [#allocation2], %s1599_s15  ;;  %s2310_s7 = scalar_lea.sflag [#allocation3], %s233_s13 }
  0x35   : > { %s244_s14 = sshll.u32 %s237_s29, 4  ;;  %s2045_s12 = scalar_lea.hbm %s2306_s2, 2048  ;;  %s2308_s14 = int_to_ptr.vmem [resolvable:$true] %s244_s14 }
  0x36   : > { %p2046_p5 = scmp.ne.s32.totalorder %s2306_s2, %s2045_s12  ;;  %p2047_p2 = pneg %p2289_p8 }
  0x37   : > { %s2050_s19 = scalar_lea.hbm %s2937_s0, 4096  ;;  %p2051_p7 = scmp.lt.s32.totalorder %s2306_s2, %s2937_s0 }
  0x38   : > { %p2048_p0 = pnand %p2047_p2, %p2046_p5  ;;  %p2052_p4 = scmp.lt.s32.totalorder %s2050_s19, %s2045_s12 }
  0x3a   : > { %p2049_p3 = pneg %p2048_p0  ;;  %p2053_p11 = por %p2052_p4, %p2051_p7 }
  0x3c   : > { %p2054_p12 = pnand %p2053_p11, %p2049_p3 }
  0x3e   : > { %2057 = shalt.err (!%p2054_p12)
}
  0x3f   : > { %s2058_s13 = scalar_lea.vmem %s2308_s14, 2048  ;;  %s2147_s15 = smov [#allocation2]  }
  0x40   : > { %p2059_p9 = scmp.ne.s32.totalorder %s2308_s14, %s2058_s13  ;;  %s2063_s26 = sshll.u32 %s2147_s15, 4  ;;  %s2064_s26 = int_to_ptr.vmem [resolvable:$false] %s2063_s26 }
  0x41   : > { %s2065_s29 = scalar_lea.vmem %s2064_s26, 4096  ;;  %p2066_p5 = scmp.lt.s32.totalorder %s2308_s14, %s2064_s26 }
  0x42   : > { %p2061_p10 = pnand %p2059_p9, %p2047_p2  ;;  %p2067_p0 = scmp.lt.s32.totalorder %s2065_s29, %s2058_s13 }
  0x44   : > { %p2062_p1 = pneg %p2061_p10  ;;  %p2068_p6 = por %p2067_p0, %p2066_p5 }
  0x46   : > { %p2069_p13 = pnand %p2068_p6, %p2062_p1 }
  0x48   : > { %2072 = shalt.err (!%p2069_p13)
}
  0x49   : > { %s2148_s12 = smov 512   ;;  %s2149_s16 = smov 256  }
  0x4a   : > { %s2150_s18 = smov 16   ;;  %p2957_p2 = scmp.ne.s32.totalorder %s2953_s11, 0 }
  0x4b   : > { %1716 = dma.hbm_to_vmem [thread:$0]  (!%p2289_p8), %s2306_s2, 2048, %s2308_s14, %s2310_s7, %s2148_s12, %s2149_s16, %s2150_s18  }
  0x4c   : > { %256 = sbr.rel (%p2957_p2) target bundleno = 1849 (0x739), region = 44  ;;  %s2334_s19 = sand.u32 (!%p2957_p2), 1, %s2133_s22  }
  0x4d   : > { %s1603_s17 = sshll.u32 (!%p2957_p2), %s2334_s19, 7  ;;  %s259_s20 = scalar_lea.sflag (!%p2957_p2), [#allocation3], %s2334_s19 }
  0x4e   : > { %s2340_s13 = scalar_lea.vmem (!%p2957_p2), [#allocation2], %s1603_s17  ;;  %p2958_p6 = scmp.ne.s32.totalorder (!%p2957_p2), %s2950_s8, 0 }
  0x51   : > { %2116 = dma.done.wait (%p2958_p6), %s259_s20, 2048  }
  0x52   : > { %2118 = vsyncadd (%p2958_p6), %s259_s20, 4294965248  ;;  %p2959_p13 = scmp.eq.s32.totalorder %s2222_s25, 0 }
  0x54   : > { %2120 = dma.done.wait (%p2959_p13), [#allocation6], 512   ;;  %p2960_p8 = pmov %p2959_p13 }
  0x55   : > { %v2151_v0 = vmov 0   ;;  %v2152_v1 = vmov 3   ;;  %v315_v2 = vld [vmem:[%s2340_s13 + $0x68] sm:$0xff]  ;;  %v317_v3 = vld [vmem:[%s2340_s13 + $0x78] sm:$0xff]  ;;  %v314_v4 = vld [vmem:[%s2340_s13 + $0x60] sm:$0xff]  ;;  %vm344_vm0 = vcmask 523264  }
  0x56   : > { %2122 = vsyncadd (%p2960_p8), [#allocation6], 4294966784  ;;  %383 = vmatprep.mubr.bf16.mxu0 %v2151_v0  ;;  %1781 = vset.pattern.permute.xlu1 %v2152_v1  ;;  %v333_v5 = vpack.c.bf16 %v317_v3, %v315_v2  ;;  %v316_v6 = vld [vmem:[%s2340_s13 + $0x70] sm:$0xff]  ;;  %v311_v7 = vld [vmem:[%s2340_s13 + $0x48] sm:$0xff]  ;;  %v2153_v32 = vmov 4   ;;  %s2157_s20 = smov 2  }
  0x57   : > { %1780 = vset.pattern.permute.xlu0 %v2152_v1  ;;  %752 = vmatprep.mubr.bf16.mxu1 %v2151_v0  ;;  %v313_v8 = vld [vmem:[%s2340_s13 + $0x58] sm:$0xff]  ;;  %v332_v9 = vpack.c.bf16 %v316_v6, %v314_v4  ;;  %v310_v11 = vld [vmem:[%s2340_s13 + $0x40] sm:$0xff]  ;;  %v312_v12 = vld [vmem:[%s2340_s13 + $0x50] sm:$0xff]  ;;  %s2158_s2 = smov 4   ;;  %vm662_vm9 = vcmask 15360   ;;  %vm617_vm12 = vcmask 31744  }
  0x58   : > { %v331_v10 = vpack.c.bf16 %v313_v8, %v311_v7  ;;  %v307_v13 = vld [vmem:[%s2340_s13 + $0x28] sm:$0xff]  ;;  %359 = vmatprep.subr.bf16.mxu0 %v333_v5  ;;  %v309_v14 = vld [vmem:[%s2340_s13 + $0x38] sm:$0xff]  ;;  %v330_v15 = vpack.c.bf16 %v312_v12, %v310_v11  ;;  %v306_v16 = vld [vmem:[%s2340_s13 + $0x20] sm:$0xff]  ;;  %v2154_v11 = vmov 5   ;;  %vm713_vm15 = vcmask 785408   ;;  %s2855_s14 = scalar_lea.vmem [#allocation8], %s1603_s17 }
  0x59   : > { %360 = vmatpush1.bf16.msra.mxu0 %v332_v9  ;;  %v308_v17 = vld [vmem:[%s2340_s13 + $0x30] sm:$0xff]  ;;  %v329_v18 = vpack.c.bf16 %v309_v14, %v307_v13  ;;  %v303_v19 = vld [vmem:[%s2340_s13 + $0x8] sm:$0xff]  ;;  %v305_v20 = vld [vmem:[%s2340_s13 + $0x18] sm:$0xff]  ;;  %s1689_s17 = sshll.u32 %s2222_s25, 8  ;;  %s1502_s7 = sshll.u32 %s2855_s14, 4  ;;  %s2891_s7 = int_to_ptr.vmem [resolvable:$true] %s1502_s7 }
  0x5a   : > { %361 = vmatprep.subr.bf16.mxu0 %v331_v10  ;;  %v302_v21 = vld [vmem:[%s2340_s13] sm:$0xff]  ;;  %v304_v22 = vld [vmem:[%s2340_s13 + $0x10] sm:$0xff]  ;;  %v328_v25 = vpack.c.bf16 %v308_v17, %v306_v16  ;;  %v2382_v26 = vld [vmem:[%s2942_s5 + $0x8] sm:$0xff]  ;;  %v327_v28 = vpack.c.bf16 %v305_v20, %v303_v19  ;;  %s2889_s29 = scalar_lea.hbm %s2943_s6, %s1689_s17  ;;  %s1489_s25 = scalar_lea.sflag [#allocation4], %s2334_s19 }
  0x5b   : > { %v2371_v23 = vld [vmem:[%s2942_s5] sm:$0xff]  ;;  %v2376_v24 = vld [vmem:[%s2942_s5 + $0x10] sm:$0xff]  ;;  %v2387_v27 = vld [vmem:[%s2942_s5 + $0x18] sm:$0xff]  ;;  %v326_v29 = vpack.c.bf16 %v304_v22, %v302_v21  ;;  %s2073_s12 = scalar_lea.vmem %s2891_s7, 2048  ;;  %p2965_p7 = scmp.ne.s32.totalorder %s2951_s9, 0 }
  0x5c   : > { %774 = vperm.xlu1 %1781, %v2371_v23   ;;  %782 = vperm.xlu0 %1780, %v2376_v24   ;;  %v1883_v30 = vld [vmem:[%s2938_s1] sm:$0xff]   ;;  %v1884_v31 = vld [vmem:[%s2938_s1 + $0x8] sm:$0xff]   ;;  %p2074_p3 = scmp.ne.s32.totalorder %s2891_s7, %s2073_s12  ;;  %s2162_s16 = smov [#allocation8]  }
  0x5d   : > { %362 = vmatpush1.bf16.msra.mxu0 %v330_v15  ;;  %s2077_s18 = sshll.u32 %s2162_s16, 4  ;;  %s2078_s18 = int_to_ptr.vmem [resolvable:$false] %s2077_s18 }
  0x5e   : > { %363 = vmatprep.subr.bf16.mxu0 %v329_v18  ;;  %p2075_p4 = pnand %p2074_p3, %p2965_p7  ;;  %p2080_p12 = scmp.lt.s32.totalorder %s2891_s7, %s2078_s18 }
  0x60   : > { %778 = vperm.xlu1 %1781, %v2382_v26   ;;  %786 = vperm.xlu0 %1780, %v2387_v27   ;;  %p2076_p11 = pneg %p2075_p4 }
  0x61   : > { %364 = vmatpush1.bf16.msra.mxu0 %v328_v25 }
  0x62   : > { %365 = vmatprep.subr.bf16.mxu0 %v327_v28 }
  0x64   : > { %1783 = vset.pattern.permute.xlu1 %v2151_v0  ;;  %1782 = vset.pattern.permute.xlu0 %v2151_v0 }
  0x65   : > { %366 = vmatpush1.bf16.msra.mxu0 %v326_v29  ;;  %433 = vperm.xlu1 %1783, %v2387_v27  }
  0x66   : > { %428 = vperm.xlu0 %1782, %v2376_v24  }
  0x68   : > { %1609 = vmatmul.mubr.msk.bf16.vlgmr.msra.gmra.mxu0 %vm344_vm0, %v1883_v30 }
  0x69   : > { %393 = vmatprep.mubr.bf16.mxu0 %v2151_v0  ;;  %418 = vperm.xlu1 %1783, %v2371_v23  }
  0x6a   : > { %423 = vperm.xlu0 %1782, %v2382_v26  }
  0x6d   : > { %1785 = vset.pattern.permute.xlu1 %v2153_v32 }
  0x6e   : > { %1784 = vset.pattern.permute.xlu0 %v2153_v32 }
  0x70   : > { %1610 = vmatmul.mubr.msk.bf16.gmra.mxu0 %vm344_vm0, %v1884_v31 }
  0x71   : > { %1101 = vmatprep.mubr.bf16.mxu0 %v2151_v0 }
  0xd7   : > { %v775_v33 = vpop.permute.xlu1 %774  ;;  %v783_v34 = vpop.permute.xlu0 %782 }
  0xdb   : > { %v779_v35 = vpop.permute.xlu1 %778  ;;  %v2408_v36 = vpop.permute.xlu0 %786 }
  0xe0   : > { %v2410_v37 = vpop.permute.xlu1 %433 }
  0xe1   : > { %v429_v38 = vpop.permute.xlu0 %428 }
  0xe4   : > { %v419_v39 = vpop.permute.xlu1 %418 }
  0xe5   : > { %v424_v45 = vpop.permute.xlu0 %423 }
 0x128   : > { %v385_v40 = vpop.f32.mrf.mxu0 }
 0x129   : > { %vm408_vm1 = vcmp.ge.f32.partialorder %v385_v40, 0.0  ;;  %v789_v41 = vmul.f32 %v775_v33, %v385_v40  ;;  %v436_v44 = vmul.f32 %v419_v39, %v385_v40 }
 0x12a   : > { %v387_v42 = vpop.f32.mrf.mxu0 }
 0x12b   : > { %v2412_v43 = vsel %vm408_vm1, %v385_v40, %v789_v41  ;;  %v2415_v48 = vsel %vm408_vm1, %v385_v40, %v436_v44  ;;  %v790_v50 = vmul.f32 %v775_v33, %v387_v42  ;;  %vm409_vm3 = vcmp.ge.f32.partialorder %v387_v42, 0.0 }
 0x12c   : > { %805 = vadd.xlane.f32.xlu0 %v2412_v43  ;;  %v389_v46 = vpop.f32.mrf.mxu0  ;;  %v437_v55 = vmul.f32 %v419_v39, %v387_v42 }
 0x12d   : > { %vm410_vm2 = vcmp.ge.f32.partialorder %v389_v46, 0.0  ;;  %v791_v47 = vmul.f32 %v779_v35, %v389_v46  ;;  %v438_v51 = vmul.f32 %v424_v45, %v389_v46  ;;  %v2421_v53 = vsel %vm409_vm3, %v387_v42, %v790_v50 }
 0x12e   : > { %v391_v52 = vpop.f32.mrf.mxu0  ;;  %v2427_v58 = vsel %vm409_vm3, %v387_v42, %v437_v55 }
 0x12f   : > { %v2417_v49 = vsel %vm410_vm2, %v389_v46, %v791_v47  ;;  %v2423_v54 = vsel %vm410_vm2, %v389_v46, %v438_v51  ;;  %v792_v56 = vmul.f32 %v779_v35, %v391_v52  ;;  %vm411_vm4 = vcmp.ge.f32.partialorder %v391_v52, 0.0 }
 0x130   : > { %452 = vadd.xlane.f32.xlu0 %v2415_v48  ;;  %807 = vadd.xlane.f32.xlu1 %v2417_v49  ;;  %v395_v57 = vpop.f32.mrf.mxu0  ;;  %v439_v60 = vmul.f32 %v424_v45, %v391_v52 }
 0x131   : > { %v2429_v59 = vsel %vm411_vm4, %v391_v52, %v792_v56  ;;  %v440_v61 = vmul.f32 %v429_v38, %v395_v57  ;;  %vm412_vm5 = vcmp.ge.f32.partialorder %v395_v57, 0.0  ;;  %v793_v2 = vmul.f32 %v783_v34, %v395_v57 }
 0x132   : > { %v397_v62 = vpop.f32.mrf.mxu0  ;;  %v2433_v63 = vsel %vm411_vm4, %v391_v52, %v439_v60 }
 0x133   : > { %v2435_v1 = vsel %vm412_vm5, %v395_v57, %v440_v61  ;;  %v794_v3 = vmul.f32 %v783_v34, %v397_v62  ;;  %vm413_vm6 = vcmp.ge.f32.partialorder %v397_v62, 0.0  ;;  %v2439_v4 = vsel %vm412_vm5, %v395_v57, %v793_v2 }
 0x134   : > { %849 = vadd.xlane.f32.xlu0 %v2421_v53  ;;  %454 = vadd.xlane.f32.xlu1 %v2423_v54  ;;  %v441_v6 = vmul.f32 %v429_v38, %v397_v62  ;;  %v399_v7 = vpop.f32.mrf.mxu0  ;;  %v2155_v57 = vmov 1  }
 0x135   : > { %v2441_v5 = vsel %vm413_vm6, %v397_v62, %v794_v3  ;;  %v795_v9 = vmul.f32 %v2408_v36, %v399_v7  ;;  %vm414_vm7 = vcmp.ge.f32.partialorder %v399_v7, 0.0  ;;  %v442_v12 = vmul.f32 %v2410_v37, %v399_v7 }
 0x136   : > { %v2445_v8 = vsel %vm413_vm6, %v397_v62, %v441_v6  ;;  %v401_v13 = vpop.f32.mrf.mxu0 }
 0x137   : > { %v2450_v10 = vsel %vm414_vm7, %v399_v7, %v795_v9  ;;  %v2462_v14 = vsel %vm414_vm7, %v399_v7, %v442_v12  ;;  %v796_v15 = vmul.f32 %v2408_v36, %v401_v13  ;;  %vm415_vm8 = vcmp.ge.f32.partialorder %v401_v13, 0.0 }
 0x138   : > { %497 = vadd.xlane.f32.xlu0 %v2427_v58  ;;  %851 = vadd.xlane.f32.xlu1 %v2429_v59  ;;  %v443_v17 = vmul.f32 %v2410_v37, %v401_v13 }
 0x139   : > { %v2466_v16 = vsel %vm415_vm8, %v401_v13, %v796_v15 }
 0x13a   : > { %v2470_v18 = vsel %vm415_vm8, %v401_v13, %v443_v17  ;;  %vm1386_vm8 = vcmask 261120  }
 0x13c   : > { %499 = vadd.xlane.f32.xlu1 %v2433_v63  ;;  %456 = vadd.xlane.f32.xlu0 %v2435_v1 }
 0x140   : > { %809 = vadd.xlane.f32.xlu1 %v2439_v4  ;;  %853 = vadd.xlane.f32.xlu0 %v2441_v5 }
 0x144   : > { %501 = vadd.xlane.f32.xlu0 %v2445_v8 }
 0x148   : > { %811 = vadd.xlane.f32.xlu0 %v2450_v10 }
 0x151   : > { %906 = vperm.xlu1 %1785, %v2387_v27  }
 0x155   : > { %1786 = vset.pattern.permute.xlu1 %v2154_v11 }
 0x156   : > { %926 = vperm.xlu1 %1786, %v2376_v24  }
 0x15a   : > { %930 = vperm.xlu1 %1786, %v2387_v27  }
 0x15e   : > { %1787 = vset.pattern.permute.xlu1 %v2153_v32  ;;  %902 = vperm.xlu0 %1784, %v2376_v24  }
 0x15f   : > { %894 = vperm.xlu1 %1787, %v2371_v23  }
 0x162   : > { %1788 = vset.pattern.permute.xlu0 %v2154_v11 }
 0x163   : > { %898 = vperm.xlu1 %1787, %v2382_v26  }
 0x167   : > { %1789 = vset.pattern.permute.xlu1 %v2154_v11 }
 0x187   : > { %458 = vadd.xlane.f32.xlu1 %v2462_v14 }
 0x18b   : > { %855 = vadd.xlane.f32.xlu1 %v2466_v16 }
 0x18f   : > { %503 = vadd.xlane.f32.xlu1 %v2470_v18 }
 0x1b5   : > { %v806_v19 = vpop.xlane.xlu0 %805 }
 0x1b6   : > { %v813_v20 = vmul.f32 0.0078125, %v806_v19  ;;  %v2156_v19 = vmov 2  }
 0x1b8   : > { %v2474_v21 = vsub.f32 %v2412_v43, %v813_v20 }
 0x1b9   : > { %v453_v22 = vpop.xlane.xlu0 %452  ;;  %v808_v25 = vpop.xlane.xlu1 %807 }
 0x1ba   : > { %v814_v28 = vmul.f32 0.0078125, %v808_v25  ;;  %v821_v29 = vmul.f32 %v2474_v21, %v2474_v21  ;;  %v461_v60 = vmul.f32 0.0078125, %v453_v22 }
 0x1bc   : > { %825 = vadd.xlane.f32.xlu0 %v821_v29  ;;  %v2479_v30 = vsub.f32 %v2417_v49, %v814_v28  ;;  %v2517_v62 = vsub.f32 %v2415_v48, %v461_v60 }
 0x1bd   : > { %v850_v31 = vpop.xlane.xlu0 %849  ;;  %v455_v32 = vpop.xlane.xlu1 %454 }
 0x1be   : > { %v857_v33 = vmul.f32 0.0078125, %v850_v31  ;;  %v822_v34 = vmul.f32 %v2479_v30, %v2479_v30  ;;  %v462_v3 = vmul.f32 0.0078125, %v455_v32  ;;  %v469_v6 = vmul.f32 %v2517_v62, %v2517_v62 }
 0x1c0   : > { %v2484_v35 = vsub.f32 %v2421_v53, %v857_v33  ;;  %827 = vadd.xlane.f32.xlu1 %v822_v34  ;;  %v2529_v9 = vsub.f32 %v2423_v54, %v462_v3 }
 0x1c1   : > { %v498_v36 = vpop.xlane.xlu0 %497  ;;  %v852_v37 = vpop.xlane.xlu1 %851 }
 0x1c2   : > { %v858_v38 = vmul.f32 0.0078125, %v852_v37  ;;  %v865_v39 = vmul.f32 %v2484_v35, %v2484_v35 }
 0x1c4   : > { %869 = vadd.xlane.f32.xlu0 %v865_v39  ;;  %v2489_v40 = vsub.f32 %v2429_v59, %v858_v38 }
 0x1c5   : > { %v500_v41 = vpop.xlane.xlu1 %499  ;;  %v457_v42 = vpop.xlane.xlu0 %456 }
 0x1c6   : > { %v463_v43 = vmul.f32 0.0078125, %v457_v42  ;;  %v866_v44 = vmul.f32 %v2489_v40, %v2489_v40 }
 0x1c8   : > { %v2494_v45 = vsub.f32 %v2435_v1, %v463_v43  ;;  %871 = vadd.xlane.f32.xlu1 %v866_v44  ;;  %v505_v1 = vmul.f32 0.0078125, %v498_v36 }
 0x1c9   : > { %v810_v46 = vpop.xlane.xlu1 %809  ;;  %v854_v47 = vpop.xlane.xlu0 %853 }
 0x1ca   : > { %v815_v49 = vmul.f32 0.0078125, %v810_v46  ;;  %v859_v50 = vmul.f32 0.0078125, %v854_v47  ;;  %v471_v51 = vmul.f32 %v2494_v45, %v2494_v45 }
 0x1cc   : > { %477 = vadd.xlane.f32.xlu1 %v471_v51  ;;  %v2499_v52 = vsub.f32 %v2439_v4, %v815_v49  ;;  %v2502_v53 = vsub.f32 %v2441_v5, %v859_v50  ;;  %v2522_v4 = vsub.f32 %v2427_v58, %v505_v1  ;;  %v506_v5 = vmul.f32 0.0078125, %v500_v41 }
 0x1cd   : > { %v2512_v59 = vpop.permute.xlu1 %906  ;;  %v470_v58 = vmul.f32 %v2529_v9, %v2529_v9  ;;  %v502_v20 = vpop.xlane.xlu0 %501 }
 0x1ce   : > { %v823_v55 = vmul.f32 %v2499_v52, %v2499_v52  ;;  %v867_v56 = vmul.f32 %v2502_v53, %v2502_v53  ;;  %v513_v7 = vmul.f32 %v2522_v4, %v2522_v4  ;;  %v2532_v48 = vsub.f32 %v2433_v63, %v506_v5 }
 0x1cf   : > { %v507_v22 = vmul.f32 0.0078125, %v502_v20 }
 0x1d0   : > { %829 = vadd.xlane.f32.xlu0 %v823_v55  ;;  %v514_v12 = vmul.f32 %v2532_v48, %v2532_v48 }
 0x1d1   : > { %v2514_v61 = vpop.permute.xlu1 %926  ;;  %v812_v25 = vpop.xlane.xlu0 %811  ;;  %v2550_v28 = vsub.f32 %v2445_v8, %v507_v22 }
 0x1d2   : > { %v816_v29 = vmul.f32 0.0078125, %v812_v25 }
 0x1d3   : > { %v515_v31 = vmul.f32 %v2550_v28, %v2550_v28 }
 0x1d4   : > { %873 = vadd.xlane.f32.xlu0 %v867_v56 }
 0x1d5   : > { %v2519_v2 = vpop.permute.xlu1 %930 }
 0x1d9   : > { %v2557_v33 = vpop.permute.xlu0 %902 }
 0x1da   : > { %v2534_v11 = vpop.permute.xlu1 %894 }
 0x1dd   : > { %922 = vperm.xlu1 %1789, %v2382_v26  }
 0x1de   : > { %v2540_v13 = vpop.permute.xlu1 %898 }
 0x1e1   : > { %1790 = vset.pattern.permute.xlu1 %v2155_v57 }
 0x1ea   : > { %918 = vperm.xlu0 %1788, %v2371_v23  }
 0x1ee   : > { %1791 = vset.pattern.permute.xlu0 %v2155_v57 }
 0x201   : > { %473 = vadd.xlane.f32.xlu1 %v469_v6 }
 0x205   : > { %517 = vadd.xlane.f32.xlu1 %v513_v7 }
 0x209   : > { %475 = vadd.xlane.f32.xlu0 %v470_v58  ;;  %519 = vadd.xlane.f32.xlu1 %v514_v12 }
 0x210   : > { %v459_v15 = vpop.xlane.xlu1 %458 }
 0x211   : > { %v464_v17 = vmul.f32 0.0078125, %v459_v15 }
 0x213   : > { %v2543_v54 = vsub.f32 %v2462_v14, %v464_v17  ;;  %v2553_v14 = vsub.f32 %v2450_v10, %v816_v29 }
 0x214   : > { %v856_v32 = vpop.xlane.xlu1 %855 }
 0x215   : > { %v472_v63 = vmul.f32 %v2543_v54, %v2543_v54  ;;  %v824_v34 = vmul.f32 %v2553_v14, %v2553_v14 }
 0x217   : > { %479 = vadd.xlane.f32.xlu0 %v472_v63 }
 0x218   : > { %v504_v36 = vpop.xlane.xlu1 %503 }
 0x21a   : > { %550 = vperm.xlu1 %1790, %v2376_v24  }
 0x21e   : > { %1792 = vset.pattern.permute.xlu1 %v2156_v19 }
 0x22d   : > { %554 = vperm.xlu0 %1791, %v2387_v27  }
 0x23e   : > { %521 = vadd.xlane.f32.xlu1 %v515_v31 }
 0x242   : > { %831 = vadd.xlane.f32.xlu1 %v824_v34 }
 0x245   : > { %v826_v37 = vpop.xlane.xlu0 %825 }
 0x246   : > { %v833_v38 = vmul.f32 0.0078125, %v826_v37 }
 0x248   : > { %v837_v41 = vadd.f32 1e-05, %v833_v38  ;;  %v860_v38 = vmul.f32 0.0078125, %v856_v32 }
 0x249   : > { %v828_v8 = vpop.xlane.xlu1 %827 }
 0x24a   : > { %v834_v39 = vmul.f32 0.0078125, %v828_v8  ;;  %v2601_v8 = vsub.f32 %v2466_v16, %v860_v38 }
 0x24c   : > { %v838_v42 = vadd.f32 1e-05, %v834_v39  ;;  %v868_v39 = vmul.f32 %v2601_v8, %v2601_v8 }
 0x24d   : > { %v870_v10 = vpop.xlane.xlu0 %869 }
 0x24e   : > { %1893 = vrsqrt.f32 %v838_v42  ;;  %v877_v43 = vmul.f32 0.0078125, %v870_v10 }
 0x24f   : > { %1895 = vrsqrt.f32 %v837_v41  ;;  %v508_v41 = vmul.f32 0.0078125, %v504_v36 }
 0x250   : > { %v881_v44 = vadd.f32 1e-05, %v877_v43 }
 0x251   : > { %v872_v46 = vpop.xlane.xlu1 %871  ;;  %v2609_v10 = vsub.f32 %v2470_v18, %v508_v41 }
 0x252   : > { %1897 = vrsqrt.f32 %v881_v44  ;;  %v878_v47 = vmul.f32 0.0078125, %v872_v46 }
 0x253   : > { %574 = vperm.xlu1 %1792, %v2376_v24   ;;  %v516_v43 = vmul.f32 %v2609_v10, %v2609_v10 }
 0x254   : > { %v882_v49 = vadd.f32 1e-05, %v878_v47 }
 0x255   : > { %v2563_v50 = vpop.xlane.xlu1 %477 }
 0x256   : > { %1899 = vrsqrt.f32 %v882_v49 }
 0x257   : > { %578 = vperm.xlu1 %1792, %v2387_v27  }
 0x259   : > { %v830_v51 = vpop.xlane.xlu0 %829  ;;  %v923_v7 = vpop.permute.xlu1 %922 }
 0x25a   : > { %v835_v44 = vmul.f32 0.0078125, %v830_v51 }
 0x25b   : > { %v1894_v55 = vpop.eup %1893  ;;  %1793 = vset.pattern.permute.xlu1 %v2155_v57 }
 0x25c   : > { %v846_v56 = vmul.f32 %v1894_v55, %v2479_v30  ;;  %542 = vperm.xlu1 %1793, %v2371_v23   ;;  %v1896_v60 = vpop.eup %1895  ;;  %v839_v55 = vadd.f32 1e-05, %v835_v44 }
 0x25d   : > { %v874_v1 = vpop.xlane.xlu0 %873  ;;  %v845_v15 = vmul.f32 %v1896_v60, %v2474_v21 }
 0x25e   : > { %v911_v3 = vmul.f32 %v2540_v13, %v846_v56  ;;  %v879_v5 = vmul.f32 0.0078125, %v874_v1 }
 0x25f   : > { %v1898_v6 = vpop.eup %1897  ;;  %v909_v63 = vmul.f32 %v2534_v11, %v845_v15 }
 0x260   : > { %v2569_v58 = vadd.f32 %v923_v7, %v911_v3  ;;  %v883_v12 = vadd.f32 1e-05, %v879_v5  ;;  %546 = vperm.xlu1 %1793, %v2382_v26   ;;  %v889_v57 = vmul.f32 %v1898_v6, %v2484_v35 }
 0x262   : > { %1901 = vrsqrt.f32 %v883_v12  ;;  %v910_v25 = vmul.f32 %v2534_v11, %v889_v57 }
 0x263   : > { %v1900_v30 = vpop.eup %1899 }
 0x264   : > { %v890_v17 = vmul.f32 %v1900_v30, %v2489_v40  ;;  %1794 = vset.pattern.permute.xlu1 %v2156_v19 }
 0x265   : > { %v919_v20 = vpop.permute.xlu0 %918 }
 0x266   : > { %v912_v22 = vmul.f32 %v2540_v13, %v890_v17  ;;  %v2578_v29 = vadd.f32 %v919_v20, %v909_v63  ;;  %v2582_v34 = vadd.f32 %v919_v20, %v910_v25 }
 0x268   : > { %v2580_v31 = vadd.f32 %v923_v7, %v912_v22  ;;  %v1049_v21 = vpack.c.bf16 %v2569_v58, %v2578_v29  ;;  %v2588_v35 = vpack.i.bf16 %v2569_v58, %v2578_v29 }
 0x26a   : > { %v1050_v40 = vpack.c.bf16 %v2580_v31, %v2582_v34  ;;  %v2594_v13 = vpack.i.bf16 %v2580_v31, %v2582_v34 }
 0x26f   : > { %v1902_v11 = vpop.eup %1901 }
 0x270   : > { %v891_v19 = vmul.f32 %v1902_v11, %v2502_v53 }
 0x272   : > { %v2598_v37 = vmul.f32 %v2557_v33, %v891_v19 }
 0x284   : > { %875 = vadd.xlane.f32.xlu1 %v868_v39 }
 0x28a   : > { %v2606_v42 = vpop.xlane.xlu1 %473 }
 0x28e   : > { %v518_v53 = vpop.xlane.xlu1 %517 }
 0x28f   : > { %v525_v16 = vmul.f32 0.0078125, %v518_v53 }
 0x291   : > { %v529_v46 = vadd.f32 1e-05, %v525_v16 }
 0x292   : > { %v520_v32 = vpop.xlane.xlu1 %519  ;;  %v476_v16 = vpop.xlane.xlu0 %475 }
 0x293   : > { %v526_v47 = vmul.f32 0.0078125, %v520_v32  ;;  %1903 = vrsqrt.f32 %v529_v46 }
 0x294   : > { %1905 = vrsqrt.f32 %v839_v55 }
 0x295   : > { %566 = vperm.xlu1 %1794, %v2371_v23   ;;  %v530_v36 = vadd.f32 1e-05, %v526_v47 }
 0x296   : > { %v2613_v49 = vpop.permute.xlu1 %550 }
 0x297   : > { %1907 = vrsqrt.f32 %v530_v36 }
 0x2a0   : > { %v1904_v6 = vpop.eup %1903  ;;  %v480_v55 = vpop.xlane.xlu0 %479 }
 0x2a1   : > { %v1906_v12 = vpop.eup %1905  ;;  %v537_v15 = vmul.f32 %v1904_v6, %v2522_v4  ;;  %v484_v36 = vmul.f32 0.0078125, %v480_v55 }
 0x2a2   : > { %v847_v25 = vmul.f32 %v1906_v12, %v2499_v52 }
 0x2a4   : > { %v1908_v57 = vpop.eup %1907  ;;  %v913_v53 = vmul.f32 %v2557_v33, %v847_v25  ;;  %v488_v33 = vadd.f32 1e-05, %v484_v36 }
 0x2a5   : > { %v538_v22 = vmul.f32 %v1908_v57, %v2532_v48 }
 0x2a6   : > { %v937_v48 = vadd.f32 %v2514_v61, %v913_v53 }
 0x2b9   : > { %523 = vadd.xlane.f32.xlu1 %v516_v43 }
 0x2c7   : > { %v522_v56 = vpop.xlane.xlu1 %521 }
 0x2c8   : > { %v527_v60 = vmul.f32 0.0078125, %v522_v56 }
 0x2ca   : > { %v531_v18 = vadd.f32 1e-05, %v527_v60  ;;  %570 = vperm.xlu1 %1794, %v2382_v26  }
 0x2cb   : > { %v832_v1 = vpop.xlane.xlu1 %831 }
 0x2cc   : > { %1909 = vrsqrt.f32 %v531_v18  ;;  %v836_v3 = vmul.f32 0.0078125, %v832_v1 }
 0x2ce   : > { %v840_v5 = vadd.f32 1e-05, %v836_v3  ;;  %1796 = vrot.lane.b32.xlu1 %v2594_v13, %s2157_s20  ;;  %v938_v3 = vadd.f32 %v2514_v61, %v2598_v37 }
 0x2cf   : > { %v2618_v51 = vpop.permute.xlu1 %574 }
 0x2d0   : > { %1911 = vrsqrt.f32 %v840_v5 }
 0x2d3   : > { %v2620_v7 = vpop.permute.xlu1 %578 }
 0x2d7   : > { %v2623_v30 = vpop.permute.xlu1 %542 }
 0x2d8   : > { %v2626_v17 = vmul.f32 %v2623_v30, %v537_v15  ;;  %v481_v15 = vmul.f32 0.0078125, %v2606_v42 }
 0x2d9   : > { %v1910_v63 = vpop.eup %1909 }
 0x2da   : > { %v539_v20 = vmul.f32 %v1910_v63, %v2550_v28  ;;  %v485_v37 = vadd.f32 1e-05, %v481_v15 }
 0x2db   : > { %v2631_v11 = vpop.permute.xlu1 %546 }
 0x2dc   : > { %v562_v19 = vmul.f32 %v2613_v49, %v539_v20  ;;  %v2635_v38 = vmul.f32 %v2631_v11, %v538_v22 }
 0x2dd   : > { %v1912_v4 = vpop.eup %1911 }
 0x2de   : > { %v2638_v39 = vadd.f32 %v2618_v51, %v562_v19  ;;  %v848_v41 = vmul.f32 %v1912_v4, %v2553_v14  ;;  %v483_v14 = vmul.f32 0.0078125, %v2563_v50 }
 0x2e0   : > { %v915_v28 = vmul.f32 %v2512_v59, %v848_v41  ;;  %v487_v56 = vadd.f32 1e-05, %v483_v14 }
 0x2e2   : > { %v939_v52 = vadd.f32 %v2519_v2, %v915_v28 }
 0x2e4   : > { %v1800_v43 = vpack.i.bf16 %v939_v52, %v937_v48  ;;  %v1051_v32 = vpack.c.bf16 %v939_v52, %v937_v48 }
 0x2e6   : > { %1801 = vrot.lane.b32.xlu1 %v1800_v43, %s2157_s20 }
 0x30d   : > { %v876_v44 = vpop.xlane.xlu1 %875 }
 0x30e   : > { %v880_v46 = vmul.f32 0.0078125, %v876_v44 }
 0x310   : > { %v884_v47 = vadd.f32 1e-05, %v880_v46 }
 0x311   : > { %v567_v58 = vpop.permute.xlu1 %566 }
 0x312   : > { %1913 = vrsqrt.f32 %v884_v47 }
 0x313   : > { %1915 = vrsqrt.f32 %v488_v33 }
 0x314   : > { %1917 = vrsqrt.f32 %v487_v56 }
 0x315   : > { %1919 = vrsqrt.f32 %v485_v37 }
 0x31f   : > { %v1914_v60 = vpop.eup %1913 }
 0x320   : > { %v892_v18 = vmul.f32 %v1914_v60, %v2601_v8  ;;  %v1916_v50 = vpop.eup %1915  ;;  %v482_v8 = vmul.f32 0.0078125, %v476_v16 }
 0x321   : > { %v1918_v61 = vpop.eup %1917 }
 0x322   : > { %v916_v1 = vmul.f32 %v2512_v59, %v892_v18  ;;  %v496_v59 = vmul.f32 %v1916_v50, %v2543_v54  ;;  %v486_v42 = vadd.f32 1e-05, %v482_v8  ;;  %v495_v57 = vmul.f32 %v1918_v61, %v2494_v45  ;;  %v1920_v29 = vpop.eup %1919 }
 0x324   : > { %v940_v5 = vadd.f32 %v2519_v2, %v916_v1  ;;  %v555_v2 = vpop.permute.xlu0 %554  ;;  %v561_v54 = vmul.f32 %v2613_v49, %v495_v57  ;;  %1921 = vrsqrt.f32 %v486_v42 }
 0x325   : > { %v563_v31 = vmul.f32 %v555_v2, %v496_v59 }
 0x326   : > { %v1820_v6 = vpack.i.bf16 %v940_v5, %v938_v3  ;;  %v1052_v12 = vpack.c.bf16 %v940_v5, %v938_v3 }
 0x327   : > { %v587_v34 = vadd.f32 %v2620_v7, %v563_v31 }
 0x328   : > { %1821 = vrot.lane.b32.xlu0 %v1820_v6, %s2158_s2  ;;  %1806 = vrot.lane.b32.xlu1 %v1820_v6, %s2157_s20 }
 0x329   : > { %1073 = vmatprep.subr.bf16.mxu0 %v1052_v12 }
 0x32a   : > { %1074 = vmatpush1.bf16.msra.mxu0 %v1051_v32 }
 0x32b   : > { %1075 = vmatprep.subr.bf16.mxu0 %v1050_v40  ;;  %v585_v40 = vadd.f32 %v2618_v51, %v561_v54 }
 0x32c   : > { %1826 = vrot.lane.b32.xlu0 %v2594_v13, %s2158_s2  ;;  %1811 = vrot.lane.b32.xlu1 %v2588_v35, %s2157_s20 }
 0x32d   : > { %v1835_v13 = vpack.i.bf16 %v587_v34, %v585_v40 }
 0x32e   : > { %1076 = vmatpush1.bf16.msra.mxu0 %v1049_v21  ;;  %v493_v21 = vmul.f32 %v1920_v29, %v2517_v62 }
 0x330   : > { %1816 = vrot.lane.b32.xlu1 %v1800_v43, %s2158_s2  ;;  %v557_v22 = vmul.f32 %v2623_v30, %v493_v21 }
 0x331   : > { %v1922_v45 = vpop.eup %1921 }
 0x332   : > { %v494_v20 = vmul.f32 %v1922_v45, %v2529_v9  ;;  %v581_v19 = vadd.f32 %v567_v58, %v557_v22 }
 0x334   : > { %1831 = vrot.lane.b32.xlu1 %v2588_v35, %s2158_s2  ;;  %v559_v25 = vmul.f32 %v2631_v11, %v494_v20  ;;  %v582_v35 = vadd.f32 %v567_v58, %v2626_v17 }
 0x338   : > { %1836 = vrot.lane.b32.xlu1 %v1835_v13, %s2157_s20 }
 0x342   : > { %v524_v63 = vpop.xlane.xlu1 %523 }
 0x343   : > { %v528_v49 = vmul.f32 0.0078125, %v524_v63 }
 0x345   : > { %v532_v51 = vadd.f32 1e-05, %v528_v49 }
 0x346   : > { %v571_v4 = vpop.permute.xlu1 %570 }
 0x347   : > { %1923 = vrsqrt.f32 %v532_v51  ;;  %v583_v41 = vadd.f32 %v571_v4, %v559_v25  ;;  %v584_v53 = vadd.f32 %v571_v4, %v2635_v38  ;;  %v701_v38 = vpack.c.bf16 %v587_v34, %v585_v40 }
 0x349   : > { %v1850_v28 = vpack.i.bf16 %v583_v41, %v581_v19  ;;  %v700_v48 = vpack.c.bf16 %v584_v53, %v582_v35  ;;  %v1845_v62 = vpack.i.bf16 %v584_v53, %v582_v35  ;;  %v699_v32 = vpack.c.bf16 %v583_v41, %v581_v19 }
 0x34b   : > { %1851 = vrot.lane.b32.xlu1 %v1850_v28, %s2157_s20 }
 0x34f   : > { %1856 = vrot.lane.b32.xlu1 %v1835_v13, %s2158_s2 }
 0x353   : > { %1871 = vrot.lane.b32.xlu1 %v1850_v28, %s2158_s2 }
 0x354   : > { %v1924_v9 = vpop.eup %1923 }
 0x355   : > { %v540_v30 = vmul.f32 %v1924_v9, %v2609_v10  ;;  %v2159_v10 = vmov 6  }
 0x356   : > { %1876 = vset.pattern.permute.xlu1 %v2159_v10  ;;  %1875 = vset.pattern.permute.xlu0 %v2159_v10 }
 0x357   : > { %v564_v11 = vmul.f32 %v555_v2, %v540_v30  ;;  %1199 = vperm.xlu1 %1876, %v2387_v27  }
 0x359   : > { %v588_v52 = vadd.f32 %v2620_v7, %v564_v11  ;;  %v1797_v7 = vpop.permute.xlu1 %1796 }
 0x35a   : > { %v1799_v3 = vunpack.i.h.bf16 %v1797_v7  ;;  %v1798_v5 = vunpack.i.l.bf16 %v1797_v7 }
 0x35b   : > { %v1840_v17 = vpack.i.bf16 %v588_v52, %v2638_v39  ;;  %v702_v43 = vpack.c.bf16 %v588_v52, %v2638_v39  ;;  %1187 = vperm.xlu1 %1876, %v2371_v23   ;;  %v404_v39 = vlaneseq }
 0x35d   : > { %1841 = vrot.lane.b32.xlu0 %v1840_v17, %s2157_s20  ;;  %724 = vmatprep.subr.bf16.mxu1 %v702_v43  ;;  %v1802_v16 = vpop.permute.xlu1 %1801  ;;  %v405_v44 = vand.u32 127, %v404_v39 }
 0x35e   : > { %725 = vmatpush1.bf16.msra.mxu1 %v701_v38  ;;  %v1804_v47 = vunpack.i.h.bf16 %v1802_v16  ;;  %v1803_v55 = vunpack.i.l.bf16 %v1802_v16 }
 0x35f   : > { %726 = vmatprep.subr.bf16.mxu1 %v700_v48  ;;  %vm407_vm10 = vcmp.ge.s32.totalorder %v405_v44, 2  ;;  %vm406_vm13 = vcmp.ge.s32.totalorder %v405_v44, 4  ;;  %v1885_v48 = vld [vmem:[#allocation7] sm:$0xff]  }
 0x360   : > { %vm2699_vm11 = vmpackc.low %vm407_vm10, %vm407_vm10 }
 0x361   : > { %1846 = vrot.lane.b32.xlu0 %v1845_v62, %s2157_s20  ;;  %vm2719_vm14 = vmpackc.low %vm406_vm13, %vm406_vm13  ;;  %s2079_s20 = scalar_lea.vmem %s2078_s18, 4096 }
 0x362   : > { %727 = vmatpush1.bf16.msra.mxu1 %v699_v32  ;;  %p2081_p9 = scmp.lt.s32.totalorder %s2079_s20, %s2073_s12 }
 0x364   : > { %p2082_p10 = por %p2081_p9, %p2080_p12 }
 0x365   : > { %1861 = vrot.lane.b32.xlu0 %v1840_v17, %s2158_s2 }
 0x366   : > { %p2083_p1 = pnand %p2082_p10, %p2076_p11 }
 0x369   : > { %1866 = vrot.lane.b32.xlu0 %v1845_v62, %s2158_s2  ;;  %v1886_v62 = vld [vmem:[#allocation7 + $0x8] sm:$0xff]  }
 0x36d   : > { %1195 = vperm.xlu0 %1875, %v2376_v24  }
 0x371   : > { %1191 = vperm.xlu0 %1875, %v2382_v26  }
 0x39a   : > { %v1807_v46 = vpop.permute.xlu1 %1806  ;;  %v1822_v56 = vpop.permute.xlu0 %1821 }
 0x39b   : > { %v1809_v36 = vunpack.i.h.bf16 %v1807_v46  ;;  %v1808_v14 = vunpack.i.l.bf16 %v1807_v46  ;;  %v1824_v42 = vunpack.i.h.bf16 %v1822_v56  ;;  %v1823_v57 = vunpack.i.l.bf16 %v1822_v56 }
 0x39d   : > { %v1015_v33 = vsel %vm662_vm9, %v1803_v55, %v1808_v14  ;;  %v1016_v27 = vsel %vm662_vm9, %v1804_v47, %v1809_v36  ;;  %v1027_v24 = vsel %vm662_vm9, %v1808_v14, %v1803_v55  ;;  %v1028_v23 = vsel %vm662_vm9, %v1809_v36, %v1804_v47 }
 0x39e   : > { %v1642_v60 = vpack.c.bf16 %v1016_v27, %v1015_v33  ;;  %v1645_v18 = vpack.c.bf16 %v1028_v23, %v1027_v24  ;;  %v1812_v1 = vpop.permute.xlu1 %1811  ;;  %v1827_v34 = vpop.permute.xlu0 %1826 }
 0x39f   : > { %v1814_v6 = vunpack.i.h.bf16 %v1812_v1  ;;  %v1813_v12 = vunpack.i.l.bf16 %v1812_v1  ;;  %v1829_v49 = vunpack.i.h.bf16 %v1827_v34  ;;  %v1828_v22 = vunpack.i.l.bf16 %v1827_v34 }
 0x3a0   : > { %1643 = vmatprep.subr.msk.bf16.mxu0 %vm2699_vm11, %v1642_v60 }
 0x3a1   : > { %v1013_v50 = vsel %vm662_vm9, %v1813_v12, %v1798_v5  ;;  %v1014_v15 = vsel %vm662_vm9, %v1814_v6, %v1799_v3  ;;  %v1025_v8 = vsel %vm662_vm9, %v1798_v5, %v1813_v12  ;;  %v1026_v59 = vsel %vm662_vm9, %v1799_v3, %v1814_v6  ;;  %1646 = vmatpush1.bf16.msk.msra.mxu0 %vm2699_vm11, %v1645_v18 }
 0x3a2   : > { %v1648_v61 = vpack.c.bf16 %v1014_v15, %v1013_v50  ;;  %v1651_v2 = vpack.c.bf16 %v1026_v59, %v1025_v8  ;;  %v1817_v37 = vpop.permute.xlu1 %1816 }
 0x3a3   : > { %v1819_v31 = vunpack.i.h.bf16 %v1817_v37  ;;  %v1818_v54 = vunpack.i.l.bf16 %v1817_v37 }
 0x3a4   : > { %1649 = vmatprep.subr.msk.bf16.mxu0 %vm2699_vm11, %v1648_v61 }
 0x3a5   : > { %v972_v40 = vsel %vm617_vm12, %v1819_v31, %v1824_v42  ;;  %v984_v13 = vsel %vm617_vm12, %v1824_v42, %v1819_v31  ;;  %v971_v58 = vsel %vm617_vm12, %v1818_v54, %v1823_v57  ;;  %v983_v29 = vsel %vm617_vm12, %v1823_v57, %v1818_v54  ;;  %1652 = vmatpush1.bf16.msk.msra.mxu0 %vm2699_vm11, %v1651_v2 }
 0x3a6   : > { %v1654_v21 = vpack.c.bf16 %v972_v40, %v971_v58  ;;  %v1657_v63 = vpack.c.bf16 %v984_v13, %v983_v29  ;;  %v1832_v20 = vpop.permute.xlu1 %1831 }
 0x3a7   : > { %v1834_v25 = vunpack.i.h.bf16 %v1832_v20  ;;  %v1833_v51 = vunpack.i.l.bf16 %v1832_v20  ;;  %v1888_v20 = vld [vmem:[#allocation5 + $0x8] sm:$0xff]  }
 0x3a8   : > { %1655 = vmatprep.subr.msk.bf16.mxu0 %vm2719_vm14, %v1654_v21 }
 0x3a9   : > { %v970_v19 = vsel %vm617_vm12, %v1834_v25, %v1829_v49  ;;  %v982_v4 = vsel %vm617_vm12, %v1829_v49, %v1834_v25  ;;  %v969_v35 = vsel %vm617_vm12, %v1833_v51, %v1828_v22  ;;  %v981_v41 = vsel %vm617_vm12, %v1828_v22, %v1833_v51  ;;  %1658 = vmatpush1.bf16.msk.msra.mxu0 %vm2719_vm14, %v1657_v63  ;;  %v1887_v63 = vld [vmem:[#allocation5] sm:$0xff]  }
 0x3aa   : > { %v1660_v53 = vpack.c.bf16 %v970_v19, %v969_v35  ;;  %v1663_v28 = vpack.c.bf16 %v982_v4, %v981_v41  ;;  %v1837_v9 = vpop.permute.xlu1 %1836 }
 0x3ab   : > { %v1839_v52 = vunpack.i.h.bf16 %v1837_v9  ;;  %v1838_v17 = vunpack.i.l.bf16 %v1837_v9 }
 0x3ac   : > { %1661 = vmatprep.subr.msk.bf16.mxu0 %vm2719_vm14, %v1660_v53 }
 0x3ad   : > { %1664 = vmatpush1.bf16.msk.msra.mxu0 %vm2719_vm14, %v1663_v28 }
 0x3b0   : > { %1665 = vmatmul.mubr.msk.bf16.vlgmr.msra.gmra.mxu0 %vm713_vm15, %v1885_v48 }
 0x3b1   : > { %1111 = vmatprep.mubr.bf16.mxu0 %v2151_v0 }
 0x3b8   : > { %1666 = vmatmul.mubr.msk.bf16.gmra.mxu0 %vm713_vm15, %v1886_v62 }
 0x3b9   : > { %1431 = vmatprep.mubr.bf16.mxu0 %v2151_v0 }
 0x3bd   : > { %v1852_v30 = vpop.permute.xlu1 %1851 }
 0x3be   : > { %v1854_v55 = vunpack.i.h.bf16 %v1852_v30  ;;  %v1853_v36 = vunpack.i.l.bf16 %v1852_v30 }
 0x3c1   : > { %v1857_v16 = vpop.permute.xlu1 %1856 }
 0x3c2   : > { %v1859_v3 = vunpack.i.h.bf16 %v1857_v16  ;;  %v1858_v5 = vunpack.i.l.bf16 %v1857_v16 }
 0x3c5   : > { %v1872_v50 = vpop.permute.xlu1 %1871 }
 0x3c6   : > { %v1874_v57 = vunpack.i.h.bf16 %v1872_v50  ;;  %v1873_v31 = vunpack.i.l.bf16 %v1872_v50 }
 0x3cf   : > { %v1842_v11 = vpop.permute.xlu0 %1841 }
 0x3d0   : > { %v1844_v43 = vunpack.i.h.bf16 %v1842_v11  ;;  %v1843_v38 = vunpack.i.l.bf16 %v1842_v11 }
 0x3d2   : > { %v665_v32 = vsel %vm662_vm9, %v1838_v17, %v1843_v38  ;;  %v666_v10 = vsel %vm662_vm9, %v1839_v52, %v1844_v43  ;;  %v677_v7 = vsel %vm662_vm9, %v1843_v38, %v1838_v17  ;;  %v678_v39 = vsel %vm662_vm9, %v1844_v43, %v1839_v52 }
 0x3d3   : > { %v1614_v44 = vpack.c.bf16 %v666_v10, %v665_v32  ;;  %v1617_v46 = vpack.c.bf16 %v678_v39, %v677_v7  ;;  %v1847_v47 = vpop.permute.xlu0 %1846 }
 0x3d4   : > { %v1849_v14 = vunpack.i.h.bf16 %v1847_v47  ;;  %v1848_v33 = vunpack.i.l.bf16 %v1847_v47 }
 0x3d5   : > { %1615 = vmatprep.subr.msk.bf16.mxu1 %vm2699_vm11, %v1614_v44 }
 0x3d6   : > { %v663_v27 = vsel %vm662_vm9, %v1853_v36, %v1848_v33  ;;  %v664_v24 = vsel %vm662_vm9, %v1854_v55, %v1849_v14  ;;  %v675_v23 = vsel %vm662_vm9, %v1848_v33, %v1853_v36  ;;  %v676_v56 = vsel %vm662_vm9, %v1849_v14, %v1854_v55  ;;  %1618 = vmatpush1.bf16.msk.msra.mxu1 %vm2699_vm11, %v1617_v46 }
 0x3d7   : > { %v1620_v60 = vpack.c.bf16 %v664_v24, %v663_v27  ;;  %v1623_v18 = vpack.c.bf16 %v676_v56, %v675_v23  ;;  %v1862_v1 = vpop.permute.xlu0 %1861 }
 0x3d8   : > { %v1864_v6 = vunpack.i.h.bf16 %v1862_v1  ;;  %v1863_v12 = vunpack.i.l.bf16 %v1862_v1 }
 0x3d9   : > { %1621 = vmatprep.subr.msk.bf16.mxu1 %vm2699_vm11, %v1620_v60 }
 0x3da   : > { %v620_v15 = vsel %vm617_vm12, %v1858_v5, %v1863_v12  ;;  %v621_v8 = vsel %vm617_vm12, %v1859_v3, %v1864_v6  ;;  %v632_v59 = vsel %vm617_vm12, %v1863_v12, %v1858_v5  ;;  %v633_v61 = vsel %vm617_vm12, %v1864_v6, %v1859_v3  ;;  %1624 = vmatpush1.bf16.msk.msra.mxu1 %vm2699_vm11, %v1623_v18 }
 0x3db   : > { %v1626_v2 = vpack.c.bf16 %v621_v8, %v620_v15  ;;  %v1629_v37 = vpack.c.bf16 %v633_v61, %v632_v59  ;;  %v1867_v42 = vpop.permute.xlu0 %1866  ;;  %v1200_v59 = vpop.permute.xlu1 %1199 }
 0x3dc   : > { %v1869_v54 = vunpack.i.h.bf16 %v1867_v42  ;;  %v1868_v34 = vunpack.i.l.bf16 %v1867_v42 }
 0x3dd   : > { %1627 = vmatprep.subr.msk.bf16.mxu1 %vm2719_vm14, %v1626_v2 }
 0x3de   : > { %v618_v40 = vsel %vm617_vm12, %v1873_v31, %v1868_v34  ;;  %v619_v13 = vsel %vm617_vm12, %v1874_v57, %v1869_v54  ;;  %v630_v58 = vsel %vm617_vm12, %v1868_v34, %v1873_v31  ;;  %v631_v29 = vsel %vm617_vm12, %v1869_v54, %v1874_v57  ;;  %1630 = vmatpush1.bf16.msk.msra.mxu1 %vm2719_vm14, %v1629_v37 }
 0x3df   : > { %v1632_v26 = vpack.c.bf16 %v619_v13, %v618_v40  ;;  %v1635_v21 = vpack.c.bf16 %v631_v29, %v630_v58 }
 0x3e1   : > { %1633 = vmatprep.subr.msk.bf16.mxu1 %vm2719_vm14, %v1632_v26 }
 0x3e2   : > { %1636 = vmatpush1.bf16.msk.msra.mxu1 %vm2719_vm14, %v1635_v21 }
 0x3e5   : > { %1637 = vmatmul.mubr.msk.bf16.vlgmr.msra.gmra.mxu1 %vm713_vm15, %v1887_v63 }
 0x3e6   : > { %762 = vmatprep.mubr.bf16.mxu1 %v2151_v0 }
 0x3e8   : > { %v1196_v5 = vpop.permute.xlu0 %1195 }
 0x3ed   : > { %1638 = vmatmul.mubr.msk.bf16.gmra.mxu1 %vm713_vm15, %v1888_v20 }
 0x3ee   : > { %1441 = vmatprep.mubr.bf16.mxu1 %v2151_v0 }
 0x470   : > { %v1103_v49 = vpop.f32.mrf.mxu0 }
 0x471   : > { %v1667_v30 = vmul.f32 -1.442695, %v1103_v49  ;;  %v1188_v49 = vpop.permute.xlu1 %1187 }
 0x472   : > { %v1105_v22 = vpop.f32.mrf.mxu0 }
 0x473   : > { %v1668_v53 = vmul.f32 -1.442695, %v1105_v22 }
 0x474   : > { %v1107_v25 = vpop.f32.mrf.mxu0 }
 0x475   : > { %v1669_v11 = vmul.f32 -1.442695, %v1107_v25  ;;  %v1192_v25 = vpop.permute.xlu0 %1191 }
 0x476   : > { %v1109_v51 = vpop.f32.mrf.mxu0 }
 0x477   : > { %v1670_v62 = vmul.f32 -1.442695, %v1109_v51 }
 0x478   : > { %v1113_v19 = vpop.f32.mrf.mxu0 }
 0x479   : > { %v1671_v35 = vmul.f32 -1.442695, %v1113_v19 }
 0x47a   : > { %v1115_v4 = vpop.f32.mrf.mxu0 }
 0x47b   : > { %1925 = vpow2.f32 %v1671_v35  ;;  %v1672_v45 = vmul.f32 -1.442695, %v1115_v4 }
 0x47c   : > { %v1117_v41 = vpop.f32.mrf.mxu0 }
 0x47d   : > { %v1673_v48 = vmul.f32 -1.442695, %v1117_v41  ;;  %1927 = vpow2.f32 %v1672_v45 }
 0x47e   : > { %v1119_v28 = vpop.f32.mrf.mxu0  ;;  %1929 = vpow2.f32 %v1668_v53 }
 0x47f   : > { %v1674_v9 = vmul.f32 -1.442695, %v1119_v28  ;;  %1931 = vpow2.f32 %v1673_v48 }
 0x480   : > { %1933 = vpow2.f32 %v1670_v62 }
 0x481   : > { %1935 = vpow2.f32 %v1674_v9  ;;  %v2160_v9 = vmov 7  }
 0x482   : > { %1937 = vpow2.f32 %v1667_v30  ;;  %1878 = vset.pattern.permute.xlu1 %v2160_v9  ;;  %1877 = vset.pattern.permute.xlu0 %v2160_v9 }
 0x483   : > { %1939 = vpow2.f32 %v1669_v11 }
 0x488   : > { %v1926_v52 = vpop.eup %1925 }
 0x489   : > { %v1150_v17 = vadd.f32 1.0, %v1926_v52 }
 0x48a   : > { %v1928_v43 = vpop.eup %1927 }
 0x48b   : > { %v1930_v38 = vpop.eup %1929  ;;  %1941 = vrcp.f32 %v1150_v17  ;;  %v1151_v7 = vadd.f32 1.0, %v1928_v43 }
 0x48c   : > { %v1932_v32 = vpop.eup %1931  ;;  %v1147_v16 = vadd.f32 1.0, %v1930_v38 }
 0x48d   : > { %v1934_v10 = vpop.eup %1933  ;;  %v1152_v46 = vadd.f32 1.0, %v1932_v32  ;;  %1943 = vrcp.f32 %v1151_v7 }
 0x48e   : > { %v1936_v39 = vpop.eup %1935  ;;  %v1149_v47 = vadd.f32 1.0, %v1934_v10  ;;  %1945 = vrcp.f32 %v1147_v16 }
 0x48f   : > { %v1938_v44 = vpop.eup %1937  ;;  %v1153_v36 = vadd.f32 1.0, %v1936_v39  ;;  %1947 = vrcp.f32 %v1152_v46 }
 0x490   : > { %v1940_v55 = vpop.eup %1939  ;;  %v1146_v14 = vadd.f32 1.0, %v1938_v44  ;;  %1949 = vrcp.f32 %v1149_v47 }
 0x491   : > { %v1148_v33 = vadd.f32 1.0, %v1940_v55  ;;  %1951 = vrcp.f32 %v1153_v36 }
 0x492   : > { %1953 = vrcp.f32 %v1146_v14 }
 0x493   : > { %1955 = vrcp.f32 %v1148_v33 }
 0x498   : > { %v1942_v56 = vpop.eup %1941 }
 0x49a   : > { %v1944_v3 = vpop.eup %1943 }
 0x49b   : > { %v1946_v12 = vpop.eup %1945 }
 0x49c   : > { %v1948_v8 = vpop.eup %1947 }
 0x49d   : > { %v1950_v2 = vpop.eup %1949 }
 0x49e   : > { %v1952_v31 = vpop.eup %1951 }
 0x49f   : > { %v1954_v40 = vpop.eup %1953 }
 0x4a0   : > { %v1956_v21 = vpop.eup %1955 }
 0x4a5   : > { %v754_v27 = vpop.f32.mrf.mxu1 }
 0x4a6   : > { %v1170_v20 = vmul.f32 %v1954_v40, %v754_v27 }
 0x4a7   : > { %v756_v24 = vpop.f32.mrf.mxu1 }
 0x4a8   : > { %v1171_v54 = vmul.f32 %v1946_v12, %v756_v24  ;;  %v1202_v41 = vmul.f32 %v1188_v49, %v1170_v20  ;;  %vm1178_vm7 = vcmp.ge.f32.partialorder %v1170_v20, 0.0  ;;  %v1974_v12 = vld [vmem:[%s2942_s5 + $0x10] sm:$0xff] }
 0x4a9   : > { %v758_v23 = vpop.f32.mrf.mxu1 }
 0x4aa   : > { %v1172_v22 = vmul.f32 %v1956_v21, %v758_v23  ;;  %v1203_v35 = vmul.f32 %v1188_v49, %v1171_v54  ;;  %vm1179_vm5 = vcmp.ge.f32.partialorder %v1171_v54, 0.0  ;;  %v1210_v62 = vsel %vm1178_vm7, %v1170_v20, %v1202_v41 }
 0x4ab   : > { %v760_v60 = vpop.f32.mrf.mxu1 }
 0x4ac   : > { %v1173_v13 = vmul.f32 %v1950_v2, %v760_v60  ;;  %v1204_v45 = vmul.f32 %v1192_v25, %v1172_v22  ;;  %v1211_v28 = vsel %vm1179_vm5, %v1171_v54, %v1203_v35  ;;  %vm1180_vm6 = vcmp.ge.f32.partialorder %v1172_v22, 0.0 }
 0x4ad   : > { %v764_v18 = vpop.f32.mrf.mxu1 }
 0x4ae   : > { %v1174_v1 = vmul.f32 %v1942_v56, %v764_v18  ;;  %v1205_v51 = vmul.f32 %v1192_v25, %v1173_v13  ;;  %vm1181_vm4 = vcmp.ge.f32.partialorder %v1173_v13, 0.0  ;;  %v1212_v48 = vsel %vm1180_vm6, %v1172_v22, %v1204_v45 }
 0x4af   : > { %v766_v6 = vpop.f32.mrf.mxu1 }
 0x4b0   : > { %v1175_v50 = vmul.f32 %v1944_v3, %v766_v6  ;;  %vm1182_vm0 = vcmp.ge.f32.partialorder %v1174_v1, 0.0  ;;  %v1206_v15 = vmul.f32 %v1196_v5, %v1174_v1  ;;  %v1213_v53 = vsel %vm1181_vm4, %v1173_v13, %v1205_v51 }
 0x4b1   : > { %v768_v61 = vpop.f32.mrf.mxu1  ;;  %v2161_v6 = vmov 8  }
 0x4b2   : > { %v1176_v37 = vmul.f32 %v1948_v8, %v768_v61  ;;  %v2775_v42 = vsel %vm1182_vm0, %v1174_v1, %v1206_v15  ;;  %vm1183_vm1 = vcmp.ge.f32.partialorder %v1175_v50, 0.0  ;;  %v1207_v57 = vmul.f32 %v1196_v5, %v1175_v50  ;;  %v1973_v5 = vld [vmem:[%s2942_s5 + $0x18] sm:$0xff]  ;;  %v1976_v15 = vld [vmem:[%s2942_s5 + $0x8] sm:$0xff] }
 0x4b3   : > { %v770_v34 = vpop.f32.mrf.mxu1  ;;  %1222 = vadd.xlane.f32.xlu0 %v2775_v42 }
 0x4b4   : > { %v1177_v58 = vmul.f32 %v1952_v31, %v770_v34  ;;  %v1215_v29 = vsel %vm1183_vm1, %v1175_v50, %v1207_v57  ;;  %v1208_v26 = vmul.f32 %v1200_v59, %v1176_v37  ;;  %vm1184_vm2 = vcmp.ge.f32.partialorder %v1176_v37, 0.0  ;;  %v1975_v50 = vld [vmem:[%s2942_s5] sm:$0xff] }
 0x4b5   : > { %1266 = vadd.xlane.f32.xlu1 %v1215_v29 }
 0x4b6   : > { %vm1185_vm3 = vcmp.ge.f32.partialorder %v1177_v58, 0.0  ;;  %v1209_v63 = vmul.f32 %v1200_v59, %v1177_v58  ;;  %v2778_v19 = vsel %vm1184_vm2, %v1176_v37, %v1208_v26 }
 0x4b8   : > { %v2780_v4 = vsel %vm1185_vm3, %v1177_v58, %v1209_v63 }
 0x4b9   : > { %1224 = vadd.xlane.f32.xlu1 %v2778_v19  ;;  %1268 = vadd.xlane.f32.xlu0 %v2780_v4 }
 0x4bd   : > { %1264 = vadd.xlane.f32.xlu1 %v1213_v53  ;;  %1262 = vadd.xlane.f32.xlu0 %v1211_v28 }
 0x4c1   : > { %1220 = vadd.xlane.f32.xlu1 %v1212_v48  ;;  %1218 = vadd.xlane.f32.xlu0 %v1210_v62 }
 0x53c   : > { %v1223_v30 = vpop.xlane.xlu0 %1222 }
 0x53d   : > { %v1228_v55 = vmul.f32 0.0078125, %v1223_v30 }
 0x53e   : > { %v1267_v11 = vpop.xlane.xlu1 %1266 }
 0x53f   : > { %v2797_v24 = vsub.f32 %v2775_v42, %v1228_v55  ;;  %v1272_v23 = vmul.f32 0.0078125, %v1267_v11 }
 0x541   : > { %v2803_v18 = vsub.f32 %v1215_v29, %v1272_v23  ;;  %v1236_v1 = vmul.f32 %v2797_v24, %v2797_v24 }
 0x542   : > { %v1225_v52 = vpop.xlane.xlu1 %1224  ;;  %v1269_v17 = vpop.xlane.xlu0 %1268 }
 0x543   : > { %v1280_v3 = vmul.f32 %v2803_v18, %v2803_v18  ;;  %v1229_v8 = vmul.f32 0.0078125, %v1225_v52  ;;  %v1273_v61 = vmul.f32 0.0078125, %v1269_v17 }
 0x545   : > { %v1233_v59 = vsub.f32 %v2778_v19, %v1229_v8  ;;  %v1277_v2 = vsub.f32 %v2780_v4, %v1273_v61 }
 0x546   : > { %v1265_v43 = vpop.xlane.xlu1 %1264  ;;  %v1263_v38 = vpop.xlane.xlu0 %1262 }
 0x547   : > { %v1271_v7 = vmul.f32 0.0078125, %v1265_v43  ;;  %v1270_v39 = vmul.f32 0.0078125, %v1263_v38  ;;  %v1237_v37 = vmul.f32 %v1233_v59, %v1233_v59  ;;  %v1281_v42 = vmul.f32 %v1277_v2, %v1277_v2 }
 0x549   : > { %v2788_v36 = vsub.f32 %v1213_v53, %v1271_v7  ;;  %v2790_v14 = vsub.f32 %v1211_v28, %v1270_v39 }
 0x54a   : > { %v1221_v32 = vpop.xlane.xlu1 %1220  ;;  %v1219_v10 = vpop.xlane.xlu0 %1218 }
 0x54b   : > { %v1227_v16 = vmul.f32 0.0078125, %v1221_v32  ;;  %v1226_v44 = vmul.f32 0.0078125, %v1219_v10  ;;  %v1279_v56 = vmul.f32 %v2788_v36, %v2788_v36  ;;  %v1278_v60 = vmul.f32 %v2790_v14, %v2790_v14 }
 0x54d   : > { %v2784_v46 = vsub.f32 %v1212_v48, %v1227_v16  ;;  %v2786_v47 = vsub.f32 %v1210_v62, %v1226_v44 }
 0x54f   : > { %v1235_v33 = vmul.f32 %v2784_v46, %v2784_v46  ;;  %v1234_v27 = vmul.f32 %v2786_v47, %v2786_v47 }
 0x551   : > { %1240 = vadd.xlane.f32.xlu1 %v1235_v33  ;;  %1238 = vadd.xlane.f32.xlu0 %v1234_v27 }
 0x555   : > { %1284 = vadd.xlane.f32.xlu1 %v1279_v56  ;;  %1282 = vadd.xlane.f32.xlu0 %v1278_v60 }
 0x559   : > { %1242 = vadd.xlane.f32.xlu0 %v1236_v1 }
 0x55d   : > { %1286 = vadd.xlane.f32.xlu0 %v1280_v3 }
 0x566   : > { %1319 = vperm.xlu1 %1878, %v1973_v5  }
 0x56a   : > { %1879 = vset.pattern.permute.xlu1 %v2161_v6 }
 0x56b   : > { %1339 = vperm.xlu1 %1879, %v1974_v12  }
 0x56f   : > { %1343 = vperm.xlu1 %1879, %v1973_v5  }
 0x573   : > { %1880 = vset.pattern.permute.xlu1 %v2160_v9  ;;  %1315 = vperm.xlu0 %1877, %v1974_v12  }
 0x574   : > { %1307 = vperm.xlu1 %1880, %v1975_v50  }
 0x577   : > { %1882 = vset.pattern.permute.xlu0 %v2161_v6 }
 0x578   : > { %1311 = vperm.xlu1 %1880, %v1976_v15  }
 0x57c   : > { %1881 = vset.pattern.permute.xlu1 %v2161_v6 }
 0x57d   : > { %1331 = vperm.xlu1 %1881, %v1975_v50  }
 0x5a1   : > { %1244 = vadd.xlane.f32.xlu1 %v1237_v37 }
 0x5a5   : > { %1288 = vadd.xlane.f32.xlu1 %v1281_v42 }
 0x5b6   : > { %1335 = vperm.xlu1 %1881, %v1976_v15  }
 0x5da   : > { %v1241_v57 = vpop.xlane.xlu1 %1240  ;;  %v1239_v40 = vpop.xlane.xlu0 %1238 }
 0x5db   : > { %v1247_v35 = vmul.f32 0.0078125, %v1241_v57  ;;  %v1246_v28 = vmul.f32 0.0078125, %v1239_v40 }
 0x5dd   : > { %v1251_v9 = vadd.f32 1e-05, %v1247_v35  ;;  %v1250_v52 = vadd.f32 1e-05, %v1246_v28  ;;  %v1980_v35 = vld [vmem:[%s2340_s13 + $0x8] sm:$0xff]  ;;  %v1981_v28 = vld [vmem:[%s2340_s13 + $0x30] sm:$0xff] }
 0x5de   : > { %v1285_v31 = vpop.xlane.xlu1 %1284  ;;  %v1283_v58 = vpop.xlane.xlu0 %1282 }
 0x5df   : > { %v1291_v20 = vmul.f32 0.0078125, %v1285_v31  ;;  %v1290_v19 = vmul.f32 0.0078125, %v1283_v58 }
 0x5e1   : > { %v1295_v51 = vadd.f32 1e-05, %v1291_v20  ;;  %v1294_v48 = vadd.f32 1e-05, %v1290_v19  ;;  %v1977_v20 = vld [vmem:[%s2340_s13 + $0x20] sm:$0xff] }
 0x5e2   : > { %v1320_v54 = vpop.permute.xlu1 %1319  ;;  %v1243_v26 = vpop.xlane.xlu0 %1242 }
 0x5e3   : > { %v1248_v22 = vmul.f32 0.0078125, %v1243_v26  ;;  %1957 = vrsqrt.f32 %v1295_v51  ;;  %v1892_v26 = vld [vmem:[%s2941_s4 + $0x18] sm:$0xff]  }
 0x5e5   : > { %v1252_v41 = vadd.f32 1e-05, %v1248_v22  ;;  %v1978_v22 = vld [vmem:[%s2340_s13] sm:$0xff] }
 0x5e6   : > { %v2823_v34 = vpop.permute.xlu1 %1339  ;;  %v1287_v63 = vpop.xlane.xlu0 %1286 }
 0x5e7   : > { %v1292_v49 = vmul.f32 0.0078125, %v1287_v63 }
 0x5e9   : > { %v1296_v4 = vadd.f32 1e-05, %v1292_v49 }
 0x5ea   : > { %v1344_v13 = vpop.permute.xlu1 %1343 }
 0x5eb   : > { %1959 = vrsqrt.f32 %v1296_v4 }
 0x5ec   : > { %1961 = vrsqrt.f32 %v1252_v41 }
 0x5ee   : > { %v1316_v27 = vpop.permute.xlu0 %1315 }
 0x5ef   : > { %v2825_v29 = vpop.permute.xlu1 %1307 }
 0x5f0   : > { %v1958_v43 = vpop.eup %1957 }
 0x5f1   : > { %v1303_v33 = vmul.f32 %v1958_v43, %v2788_v36  ;;  %v1984_v43 = vld [vmem:[%s2340_s13 + $0x18] sm:$0xff] }
 0x5f3   : > { %v1312_v21 = vpop.permute.xlu1 %1311 }
 0x5f4   : > { %v1325_v50 = vmul.f32 %v1312_v21, %v1303_v33  ;;  %v1987_v33 = vld [vmem:[%s2340_s13 + $0x50] sm:$0xff] }
 0x5f8   : > { %v1332_v25 = vpop.permute.xlu1 %1331  ;;  %v1960_v38 = vpop.eup %1959 }
 0x5f9   : > { %v1962_v32 = vpop.eup %1961  ;;  %v1304_v7 = vmul.f32 %v1960_v38, %v2803_v18 }
 0x5fa   : > { %v1260_v44 = vmul.f32 %v1962_v32, %v2797_v24 }
 0x5fb   : > { %v1327_v3 = vmul.f32 %v1316_v27, %v1304_v7 }
 0x5fc   : > { %v1326_v6 = vmul.f32 %v1316_v27, %v1260_v44 }
 0x5fd   : > { %v1351_v36 = vadd.f32 %v2823_v34, %v1327_v3  ;;  %v1989_v3 = vld [vmem:[%s2340_s13 + $0x60] sm:$0xff] }
 0x62a   : > { %v1245_v45 = vpop.xlane.xlu1 %1244 }
 0x62b   : > { %v1249_v53 = vmul.f32 0.0078125, %v1245_v45 }
 0x62d   : > { %v1253_v62 = vadd.f32 1e-05, %v1249_v53 }
 0x62e   : > { %v1289_v30 = vpop.xlane.xlu1 %1288 }
 0x62f   : > { %1963 = vrsqrt.f32 %v1253_v62  ;;  %v1293_v11 = vmul.f32 0.0078125, %v1289_v30  ;;  %v1982_v62 = vld [vmem:[%s2340_s13 + $0x10] sm:$0xff] }
 0x630   : > { %1965 = vrsqrt.f32 %v1294_v48 }
 0x631   : > { %v1297_v17 = vadd.f32 1e-05, %v1293_v11  ;;  %1967 = vrsqrt.f32 %v1251_v9 }
 0x632   : > { %v1336_v12 = vpop.permute.xlu1 %1335 }
 0x633   : > { %1969 = vrsqrt.f32 %v1297_v17  ;;  %v1349_v61 = vadd.f32 %v1336_v12, %v1325_v50 }
 0x634   : > { %1971 = vrsqrt.f32 %v1250_v52  ;;  %v1983_v52 = vld [vmem:[%s2340_s13 + $0x38] sm:$0xff] }
 0x63c   : > { %v1964_v10 = vpop.eup %1963 }
 0x63d   : > { %v1261_v39 = vmul.f32 %v1964_v10, %v1233_v59  ;;  %v1966_v16 = vpop.eup %1965  ;;  %v1985_v10 = vld [vmem:[%s2340_s13 + $0x40] sm:$0xff] }
 0x63e   : > { %v1968_v55 = vpop.eup %1967  ;;  %v1302_v1 = vmul.f32 %v1966_v16, %v2790_v14  ;;  %v1350_v14 = vadd.f32 %v2823_v34, %v1326_v6  ;;  %v1889_v34 = vld [vmem:[%s2941_s4 + $0x8] sm:$0xff]  }
 0x63f   : > { %v1328_v56 = vmul.f32 %v1320_v54, %v1261_v39  ;;  %v1259_v8 = vmul.f32 %v1968_v55, %v2784_v46  ;;  %v1986_v16 = vld [vmem:[%s2340_s13 + $0x48] sm:$0xff] }
 0x640   : > { %v1970_v23 = vpop.eup %1969  ;;  %v1323_v59 = vmul.f32 %v2825_v29, %v1302_v1 }
 0x641   : > { %v1972_v60 = vpop.eup %1971  ;;  %v1305_v5 = vmul.f32 %v1970_v23, %v1277_v2  ;;  %v1352_v24 = vadd.f32 %v1344_v13, %v1328_v56  ;;  %v1324_v42 = vmul.f32 %v1312_v21, %v1259_v8  ;;  %v1988_v56 = vld [vmem:[%s2340_s13 + $0x58] sm:$0xff] }
 0x642   : > { %v1258_v18 = vmul.f32 %v1972_v60, %v2786_v47  ;;  %v1347_v57 = vadd.f32 %v1332_v25, %v1323_v59  ;;  %v1992_v59 = vld [vmem:[%s2340_s13 + $0x78] sm:$0xff] }
 0x643   : > { %v1329_v15 = vmul.f32 %v1320_v54, %v1305_v5  ;;  %v1348_v40 = vadd.f32 %v1336_v12, %v1324_v42  ;;  %v1364_v54 = vpack.c.bf16 %v1352_v24, %v1350_v14  ;;  %v1990_v12 = vld [vmem:[%s2340_s13 + $0x68] sm:$0xff] }
 0x644   : > { %v1322_v31 = vmul.f32 %v2825_v29, %v1258_v18  ;;  %v1363_v58 = vpack.c.bf16 %v1349_v61, %v1347_v57  ;;  %v1890_v29 = vld [vmem:[%s2941_s4 + $0x10] sm:$0xff]  }
 0x645   : > { %v1353_v37 = vadd.f32 %v1344_v13, %v1329_v15  ;;  %v1891_v13 = vld [vmem:[%s2941_s4] sm:$0xff]   ;;  %v1991_v18 = vld [vmem:[%s2340_s13 + $0x70] sm:$0xff] }
 0x646   : > { %v1346_v46 = vadd.f32 %v1332_v25, %v1322_v31 }
 0x647   : > { %v1365_v2 = vpack.c.bf16 %v1353_v37, %v1351_v36 }
 0x648   : > { %v1362_v47 = vpack.c.bf16 %v1348_v40, %v1346_v46 }
 0x649   : > { %1411 = vmatprep.subr.bf16.mxu0 %v1365_v2  ;;  %1690 = vmatprep.subr.bf16.mxu1 %v1365_v2 }
 0x64a   : > { %1412 = vmatpush1.bf16.msra.mxu0 %v1364_v54  ;;  %1692 = vmatpush1.bf16.msra.mxu1 %v1364_v54 }
 0x64b   : > { %1413 = vmatprep.subr.bf16.mxu0 %v1363_v58  ;;  %1691 = vmatprep.subr.bf16.mxu1 %v1363_v58 }
 0x64e   : > { %1414 = vmatpush1.bf16.msra.mxu0 %v1362_v47  ;;  %1693 = vmatpush1.bf16.msra.mxu1 %v1362_v47 }
 0x651   : > { %1680 = vmatmul.mubr.msk.bf16.vlgmr.msra.gmra.mxu1 %vm1386_vm8, %v1889_v34  ;;  %1679 = vmatmul.mubr.msk.bf16.vlgmr.msra.gmra.mxu0 %vm1386_vm8, %v1891_v13 }
 0x652   : > { %1451 = vmatprep.mubr.bf16.mxu1 %v2151_v0 }
 0x659   : > { %1681 = vmatmul.mubr.msk.bf16.gmra.mxu1 %vm1386_vm8, %v1890_v29 }
 0x65a   : > { %1461 = vmatprep.mubr.bf16.mxu1 %v2151_v0  ;;  %v1979_v0 = vld [vmem:[%s2340_s13 + $0x28] sm:$0xff] }
 0x661   : > { %1682 = vmatmul.mubr.msk.bf16.gmra.mxu1 %vm1386_vm8, %v1892_v26 }
 0x711   : > { %v1443_v21 = vpop.f32.mrf.mxu1  ;;  %v1433_v63 = vpop.f32.mrf.mxu0 }
 0x712   : > { %v1444_v49 = vadd.f32 %v1977_v20, %v1443_v21  ;;  %v1434_v25 = vadd.f32 %v1978_v22, %v1433_v63 }
 0x713   : > { %v1445_v51 = vpop.f32.mrf.mxu1  ;;  %v1435_v19 = vpop.f32.mrf.mxu0 }
 0x714   : > { %1476 = vst [vmem:[%s2855_s14 + $0x20] sm:$0xff] %v1444_v49  ;;  %v1446_v4 = vadd.f32 %v1979_v0, %v1445_v51  ;;  %1472 = vst [vmem:[%s2855_s14] sm:$0xff] %v1434_v25  ;;  %v1436_v41 = vadd.f32 %v1980_v35, %v1435_v19 }
 0x715   : > { %v1447_v45 = vpop.f32.mrf.mxu1  ;;  %v1437_v53 = vpop.f32.mrf.mxu0 }
 0x716   : > { %1477 = vst [vmem:[%s2855_s14 + $0x28] sm:$0xff] %v1446_v4  ;;  %v1448_v48 = vadd.f32 %v1981_v28, %v1447_v45  ;;  %1473 = vst [vmem:[%s2855_s14 + $0x8] sm:$0xff] %v1436_v41  ;;  %v1438_v9 = vadd.f32 %v1982_v62, %v1437_v53 }
 0x717   : > { %v1449_v30 = vpop.f32.mrf.mxu1  ;;  %v1439_v11 = vpop.f32.mrf.mxu0 }
 0x718   : > { %1478 = vst [vmem:[%s2855_s14 + $0x30] sm:$0xff] %v1448_v48  ;;  %v1450_v17 = vadd.f32 %v1983_v52, %v1449_v30  ;;  %1474 = vst [vmem:[%s2855_s14 + $0x10] sm:$0xff] %v1438_v9  ;;  %v1440_v38 = vadd.f32 %v1984_v43, %v1439_v11 }
 0x719   : > { %v1453_v32 = vpop.f32.mrf.mxu1 }
 0x71a   : > { %1479 = vst [vmem:[%s2855_s14 + $0x38] sm:$0xff] %v1450_v17  ;;  %v1454_v7 = vadd.f32 %v1985_v10, %v1453_v32  ;;  %1475 = vst [vmem:[%s2855_s14 + $0x18] sm:$0xff] %v1440_v38 }
 0x71b   : > { %v1455_v39 = vpop.f32.mrf.mxu1 }
 0x71c   : > { %1480 = vst [vmem:[%s2855_s14 + $0x40] sm:$0xff] %v1454_v7  ;;  %v1456_v44 = vadd.f32 %v1986_v16, %v1455_v39 }
 0x71d   : > { %v1457_v55 = vpop.f32.mrf.mxu1 }
 0x71e   : > { %1481 = vst [vmem:[%s2855_s14 + $0x48] sm:$0xff] %v1456_v44  ;;  %v1458_v27 = vadd.f32 %v1987_v33, %v1457_v55 }
 0x71f   : > { %v1459_v23 = vpop.f32.mrf.mxu1 }
 0x720   : > { %1482 = vst [vmem:[%s2855_s14 + $0x50] sm:$0xff] %v1458_v27  ;;  %v1460_v60 = vadd.f32 %v1988_v56, %v1459_v23 }
 0x721   : > { %v1463_v1 = vpop.f32.mrf.mxu1 }
 0x722   : > { %1483 = vst [vmem:[%s2855_s14 + $0x58] sm:$0xff] %v1460_v60  ;;  %v1464_v5 = vadd.f32 %v1989_v3, %v1463_v1 }
 0x723   : > { %v1465_v6 = vpop.f32.mrf.mxu1 }
 0x724   : > { %1484 = vst [vmem:[%s2855_s14 + $0x60] sm:$0xff] %v1464_v5  ;;  %v1466_v50 = vadd.f32 %v1990_v12, %v1465_v6 }
 0x725   : > { %v1467_v15 = vpop.f32.mrf.mxu1 }
 0x726   : > { %1485 = vst [vmem:[%s2855_s14 + $0x68] sm:$0xff] %v1466_v50  ;;  %v1468_v8 = vadd.f32 %v1991_v18, %v1467_v15 }
 0x727   : > { %v1469_v24 = vpop.f32.mrf.mxu1 }
 0x728   : > { %1486 = vst [vmem:[%s2855_s14 + $0x70] sm:$0xff] %v1468_v8  ;;  %v1470_v36 = vadd.f32 %v1992_v59, %v1469_v24 }
 0x72a   : > { %1487 = vst [vmem:[%s2855_s14 + $0x78] sm:$0xff] %v1470_v36 }
 0x72b   : > { %2086 = shalt.err (!%p2083_p1)
}
 0x72c   : > { %s2087_s13 = scalar_lea.hbm %s2889_s29, 2048  ;;  %s2091_s11 = scalar_lea.hbm %s2943_s6, 4096 }
 0x72d   : > { %p2088_p5 = scmp.ne.s32.totalorder %s2889_s29, %s2087_s13  ;;  %p2092_p6 = scmp.lt.s32.totalorder %s2889_s29, %s2943_s6 }
 0x72e   : > { %p2093_p13 = scmp.lt.s32.totalorder %s2091_s11, %s2087_s13 }
 0x72f   : > { %p2089_p0 = pnand %p2088_p5, %p2965_p7 }
 0x730   : > { %p2094_p8 = por %p2093_p13, %p2092_p6 }
 0x731   : > { %p2090_p2 = pneg %p2089_p0 }
 0x733   : > { %p2095_p3 = pnand %p2094_p8, %p2090_p2 }
 0x735   : > { %2098 = shalt.err (!%p2095_p3)
}
 0x736   : > { %s2163_s17 = smov 256   ;;  %s2164_s15 = smov 512  }
 0x737   : > { %s2165_s26 = smov 16  }
 0x738   : > { %1704 = dma.vmem_to_hbm [thread:$0]  (%p2965_p7), %s2891_s7, 2048, %s2889_s29, %s1489_s25, %s2163_s17, %s2164_s15, %s2165_s26  }
 0x739 PF: > { %s1517_s12 = sand.u32 1, %s2129_s21   ;;  %p2966_p4 = scmp.ne.s32.totalorder %s2952_s10, 0 }
 0x73a   : > { %p2967_p11 = scmp.ge.s32.totalorder %s2141_s24, 2  ;;  %s1518_s16 = scalar_lea.sflag [#allocation4], %s1517_s12 }
 0x73c   : > { %p1718_p12 = pnand %p2967_p11, %p2966_p4 }
 0x73e   : > { %p1719_p9 = pneg %p1718_p12 }
 0x740   : > { %2124 = dma.done.wait (%p1719_p9), %s1518_s16, 2048  }
 0x741   : > { %2126 = vsyncadd (%p1719_p9), %s1518_s16, 4294965248  ;;  %p20_p10 = scmp.ge.s32.totalorder %s2226_s27, 4   ;;  %s2968_s21 = smov %s2133_s22 }
 0x742   : > { %s2969_s22 = smov %s2137_s23  ;;  %s2970_s23 = smov %s2238_s30 }
 0x743   : > { %s2971_s24 = smov %s2226_s27  ;;  %22 = sbr.rel (!%p20_p10) target bundleno = 8 (0x8), region = 97 }
 0x748   :  { %1523 = vsyncpa [#allocation3], 1 }
 0x749   :  { %1525 = vsyncpa [#allocation3 + $0x1], 1 }
 0x74a   :  { %1526 = vsyncpa [#allocation6], 1 }
 0x74b   :  { %1527 = vsyncpa [#allocation4], 1 }
 0x74c   :  { %1529 = vsyncpa [#allocation4 + $0x1], 1 }

</bundles_post_ra>
